<compile_context>
chip_gen: v5e
topology: v5e:2x2
jax: 0.10.0
libtpu: 0.0.40
codegen_flags: <defaults>
</compile_context>

<pallas_src>
import jax
import jax.numpy as jnp
from jax.experimental import pallas as pl
from jax.experimental.pallas import tpu as pltpu


def _ae_kernel(x_ref,                # (TB, D_in)  bf16
               w1_ref, b1_ref,       # (D_in, H) bf16, (1, H) f32
               w23_ref, b23_ref,     # (H, H)   bf16, (1, H) f32  (fused enc2+dec1)
               w4_ref, b4_ref,       # (H, D_in) bf16, (1, D_in) f32
               out_ref):             # (TB, D_in) f32
    x = x_ref[...]

    # ---- encoder layer 1 ----
    h1 = jnp.dot(x, w1_ref[...], preferred_element_type=jnp.float32) + b1_ref[...]
    h1 = jnp.maximum(h1, 0.0)                                     # ReLU (VPU, f32)

    # ---- fused encoder layer 2 + decoder layer 1 ----
    h2 = jnp.dot(h1.astype(jnp.bfloat16), w23_ref[...],
                 preferred_element_type=jnp.float32) + b23_ref[...]
    h2 = jnp.maximum(h2, 0.0)                                     # ReLU (VPU, f32)

    # ---- decoder layer 2 ----
    y = jnp.dot(h2.astype(jnp.bfloat16), w4_ref[...],
                preferred_element_type=jnp.float32) + b4_ref[...]

    out_ref[...] = jax.nn.sigmoid(y).astype(out_ref.dtype)        # sigmoid (EUP)


def autoencoder_forward(x, params, *, tb=128):
    """Fused autoencoder forward pass, batch-tiled.

    x:       (B, D_in) float32
    params:  dict of w1,b1,w2,b2,w3,b3,w4,b4 (f32; biases stored as (1, out)).
    tb:      batch tile (rows per grid step); multiple of 128 for MXU geometry.
    """
    B, D_in = x.shape

    # Offline fusion of the two lane-sparse (latent=32) matmuls -- exact up to
    # f32 reassociation since there is no nonlinearity between them.
    w23 = params["w2"] @ params["w3"]                       # (H, H)  f32
    b23 = params["b2"] @ params["w3"] + params["b3"]        # (1, H)  f32

    # bf16 MXU operands, f32 biases/accumulation.
    xb = x.astype(jnp.bfloat16)
    w1 = params["w1"].astype(jnp.bfloat16)
    w23b = w23.astype(jnp.bfloat16)
    w4 = params["w4"].astype(jnp.bfloat16)

    # Pad batch to a multiple of the tile; rows are independent so padding is safe.
    n_tiles = pl.cdiv(B, tb)
    Bp = n_tiles * tb
    if Bp != B:
        xb = jnp.pad(xb, ((0, Bp - B), (0, 0)))

    args = (xb, w1, params["b1"], w23b, b23, w4, params["b4"])

    def resident_spec(a):
        # Constant block index -> weight/bias stays VMEM-resident across grid steps.
        return pl.BlockSpec(a.shape, lambda i: (0,) * a.ndim)

    in_specs = [pl.BlockSpec((tb, D_in), lambda i: (i, 0))] \
        + [resident_spec(a) for a in args[1:]]
    out_spec = pl.BlockSpec((tb, D_in), lambda i: (i, 0))

    out = pl.pallas_call(
        _ae_kernel,
        out_shape=jax.ShapeDtypeStruct((Bp, D_in), jnp.float32),
        grid_spec=pltpu.PrefetchScalarGridSpec(
            num_scalar_prefetch=0,
            grid=(n_tiles,),
            in_specs=in_specs,
            out_specs=out_spec,
        ),
        compiler_params=pltpu.CompilerParams(
            dimension_semantics=("parallel",)),   # megacore: split batch tiles on v7x
    )(*args)
    return out[:B]


def init_params(key, d_in, hidden, latent):
    """Deterministic init matching PyTorch nn.Linear default (U(-1/sqrt(fan_in), +))."""
    def linear(k, fan_in, fan_out):
        kw, kb = jax.random.split(k)
        bound = 1.0 / jnp.sqrt(fan_in)
        w = jax.random.uniform(kw, (fan_in, fan_out), jnp.float32, -bound, bound)
        b = jax.random.uniform(kb, (1, fan_out), jnp.float32, -bound, bound)
        return w, b

    k1, k2, k3, k4 = jax.random.split(key, 4)
    w1, b1 = linear(k1, d_in, hidden)
    w2, b2 = linear(k2, hidden, latent)
    w3, b3 = linear(k3, latent, hidden)
    w4, b4 = linear(k4, hidden, d_in)
    return dict(w1=w1, b1=b1, w2=w2, b2=b2, w3=w3, b3=b3, w4=w4, b4=b4)


def reference_forward_f32(x, p):
    """Plain-JAX f32 reference mirroring the PyTorch encoder/decoder semantics."""
    h1 = jnp.maximum(x @ p["w1"] + p["b1"], 0.0)
    z = h1 @ p["w2"] + p["b2"]
    h2 = jnp.maximum(z @ p["w3"] + p["b3"], 0.0)
    return jax.nn.sigmoid(h2 @ p["w4"] + p["b4"])


def reference_forward_mirror(x, p):
    """Plain-JAX reference that mirrors the kernel's bf16/fused math exactly."""
    w23 = p["w2"] @ p["w3"]
    b23 = p["b2"] @ p["w3"] + p["b3"]
    xb = x.astype(jnp.bfloat16)
    h1 = jnp.maximum(
        jnp.dot(xb, p["w1"].astype(jnp.bfloat16),
                preferred_element_type=jnp.float32) + p["b1"], 0.0)
    h2 = jnp.maximum(
        jnp.dot(h1.astype(jnp.bfloat16), w23.astype(jnp.bfloat16),
                preferred_element_type=jnp.float32) + b23, 0.0)
    y = jnp.dot(h2.astype(jnp.bfloat16), p["w4"].astype(jnp.bfloat16),
                preferred_element_type=jnp.float32) + p["b4"]
    return jax.nn.sigmoid(y)


if __name__ == "__main__":
    # 256 spectral bins, hidden=128, latent=32.  Batch large enough to fill the
    # MXU rows and amortize per-call overhead (4 grid steps of 128 rows).
    D_IN, HIDDEN, LATENT = 256, 128, 32
    B = 512

    key = jax.random.PRNGKey(0)
    kx, kp = jax.random.split(key)
    x = jax.random.normal(kx, (B, D_IN), jnp.float32)
    params = init_params(kp, D_IN, HIDDEN, LATENT)

    out = jax.block_until_ready(autoencoder_forward(x, params))
    assert out.shape == (B, D_IN)

    # Exact-math mirror (bf16 MXU operands + fused middle matmul) -> tight tolerance.
    mirror = reference_forward_mirror(x, params)
    assert jnp.allclose(out, mirror, atol=1e-4, rtol=1e-4), "mismatch vs bf16 mirror"

    # Original f32 semantics -> looser tolerance (bf16 rounding + reassociation).
    ref = reference_forward_f32(x, params)
    assert jnp.allclose(out, ref, atol=2e-2, rtol=2e-2), "mismatch vs f32 reference"

    # Non-multiple-of-tile batch exercises the wrapper padding path.
    x_odd = jax.random.normal(kx, (77, D_IN), jnp.float32)
    out_odd = jax.block_until_ready(autoencoder_forward(x_odd, params))
    assert out_odd.shape == (77, D_IN)
    assert jnp.allclose(out_odd, reference_forward_f32(x_odd, params),
                        atol=2e-2, rtol=2e-2), "mismatch on padded batch"

    print("KERNEL_OK")
</pallas_src>

<mosaic_0001>
module attributes {stable_mosaic.version = 11 : i64} {
  func.func @_ae_kernel(%arg0: i32, %arg1: memref<128x256xbf16, #tpu.memory_space<vmem>>, %arg2: memref<256x128xbf16, #tpu.memory_space<vmem>>, %arg3: memref<1x128xf32, #tpu.memory_space<vmem>>, %arg4: memref<128x128xbf16, #tpu.memory_space<vmem>>, %arg5: memref<1x128xf32, #tpu.memory_space<vmem>>, %arg6: memref<128x256xbf16, #tpu.memory_space<vmem>>, %arg7: memref<1x256xf32, #tpu.memory_space<vmem>>, %arg8: memref<128x256xf32, #tpu.memory_space<vmem>>) attributes {dimension_semantics = [#tpu.dimension_semantics<parallel>], iteration_bounds = array<i64: 4>, scalar_prefetch = 0 : i64, scratch_operands = 0 : i64, tpu.core_type = #tpu.core_type<tc>, window_params = [{transform_indices = @transform_0, window_bounds = array<i64: 128, 256>}, {pipeline_mode = #tpu.pipeline_mode<synchronous>, transform_indices = @transform_1, window_bounds = array<i64: 256, 128>}, {pipeline_mode = #tpu.pipeline_mode<synchronous>, transform_indices = @transform_2, window_bounds = array<i64: 1, 128>}, {pipeline_mode = #tpu.pipeline_mode<synchronous>, transform_indices = @transform_3, window_bounds = array<i64: 128, 128>}, {pipeline_mode = #tpu.pipeline_mode<synchronous>, transform_indices = @transform_4, window_bounds = array<i64: 1, 128>}, {pipeline_mode = #tpu.pipeline_mode<synchronous>, transform_indices = @transform_5, window_bounds = array<i64: 128, 256>}, {pipeline_mode = #tpu.pipeline_mode<synchronous>, transform_indices = @transform_6, window_bounds = array<i64: 1, 256>}, {transform_indices = @transform_7, window_bounds = array<i64: 128, 256>}]} {
    %c0 = arith.constant 0 : index
    %c0_0 = arith.constant 0 : index
    %0 = vector.load %arg1[%c0, %c0_0] : memref<128x256xbf16, #tpu.memory_space<vmem>>, vector<128x256xbf16>
    %c0_1 = arith.constant 0 : index
    %c0_2 = arith.constant 0 : index
    %1 = vector.load %arg2[%c0_1, %c0_2] : memref<256x128xbf16, #tpu.memory_space<vmem>>, vector<256x128xbf16>
    %cst = arith.constant dense<0.000000e+00> : vector<128x128xf32>
    %2 = tpu.matmul %0, %1, %cst {dimension_numbers = #tpu.dot_dimension_numbers<[1], [0], [0], [1], [0, 0, 1, 1], [], []>} : vector<128x256xbf16>, vector<256x128xbf16>, vector<128x128xf32> -> vector<128x128xf32>
    %c0_3 = arith.constant 0 : index
    %c0_4 = arith.constant 0 : index
    %3 = vector.load %arg3[%c0_3, %c0_4] : memref<1x128xf32, #tpu.memory_space<vmem>>, vector<1x128xf32>
    %4 = vector.broadcast %3 : vector<1x128xf32> to vector<128x128xf32>
    %5 = arith.addf %2, %4 : vector<128x128xf32>
    %cst_5 = arith.constant 0.000000e+00 : f32
    %6 = vector.broadcast %cst_5 : f32 to vector<128x128xf32>
    %7 = arith.maximumf %5, %6 : vector<128x128xf32>
    %8 = arith.truncf %7 : vector<128x128xf32> to vector<128x128xbf16>
    %c0_6 = arith.constant 0 : index
    %c0_7 = arith.constant 0 : index
    %9 = vector.load %arg4[%c0_6, %c0_7] : memref<128x128xbf16, #tpu.memory_space<vmem>>, vector<128x128xbf16>
    %cst_8 = arith.constant dense<0.000000e+00> : vector<128x128xf32>
    %10 = tpu.matmul %8, %9, %cst_8 {dimension_numbers = #tpu.dot_dimension_numbers<[1], [0], [0], [1], [0, 0, 1, 1], [], []>} : vector<128x128xbf16>, vector<128x128xbf16>, vector<128x128xf32> -> vector<128x128xf32>
    %c0_9 = arith.constant 0 : index
    %c0_10 = arith.constant 0 : index
    %11 = vector.load %arg5[%c0_9, %c0_10] : memref<1x128xf32, #tpu.memory_space<vmem>>, vector<1x128xf32>
    %12 = vector.broadcast %11 : vector<1x128xf32> to vector<128x128xf32>
    %13 = arith.addf %10, %12 : vector<128x128xf32>
    %cst_11 = arith.constant 0.000000e+00 : f32
    %14 = vector.broadcast %cst_11 : f32 to vector<128x128xf32>
    %15 = arith.maximumf %13, %14 : vector<128x128xf32>
    %16 = arith.truncf %15 : vector<128x128xf32> to vector<128x128xbf16>
    %c0_12 = arith.constant 0 : index
    %c0_13 = arith.constant 0 : index
    %17 = vector.load %arg6[%c0_12, %c0_13] : memref<128x256xbf16, #tpu.memory_space<vmem>>, vector<128x256xbf16>
    %cst_14 = arith.constant dense<0.000000e+00> : vector<128x256xf32>
    %18 = tpu.matmul %16, %17, %cst_14 {dimension_numbers = #tpu.dot_dimension_numbers<[1], [0], [0], [1], [0, 0, 1, 1], [], []>} : vector<128x128xbf16>, vector<128x256xbf16>, vector<128x256xf32> -> vector<128x256xf32>
    %c0_15 = arith.constant 0 : index
    %c0_16 = arith.constant 0 : index
    %19 = vector.load %arg7[%c0_15, %c0_16] : memref<1x256xf32, #tpu.memory_space<vmem>>, vector<1x256xf32>
    %20 = vector.broadcast %19 : vector<1x256xf32> to vector<128x256xf32>
    %21 = arith.addf %18, %20 : vector<128x256xf32>
    %22 = arith.negf %21 : vector<128x256xf32>
    %23 = math.exp %22 : vector<128x256xf32>
    %cst_17 = arith.constant 1.000000e+00 : f32
    %24 = vector.broadcast %cst_17 : f32 to vector<128x256xf32>
    %25 = arith.addf %24, %23 : vector<128x256xf32>
    %26 = arith.divf %24, %25 : vector<128x256xf32>
    %c0_18 = arith.constant 0 : index
    %c0_19 = arith.constant 0 : index
    %27 = vector.load %arg8[%c0_18, %c0_19] : memref<128x256xf32, #tpu.memory_space<vmem>>, vector<128x256xf32>
    tpu.vector_store %arg8[%c0_18, %c0_19], %26 {strides = array<i32>} : memref<128x256xf32, #tpu.memory_space<vmem>>, vector<128x256xf32>,
    return
  }
  func.func @transform_0(%arg0: i32) -> (i32, i32) {
    %c0_i32 = arith.constant 0 : i32
    %c0_i32_0 = arith.constant 0 : i32
    return %arg0, %c0_i32 : i32, i32
  }
  func.func @transform_1(%arg0: i32) -> (i32, i32) {
    %c0_i32 = arith.constant 0 : i32
    %c0_i32_0 = arith.constant 0 : i32
    %c0_i32_1 = arith.constant 0 : i32
    return %c0_i32, %c0_i32_0 : i32, i32
  }
  func.func @transform_2(%arg0: i32) -> (i32, i32) {
    %c0_i32 = arith.constant 0 : i32
    %c0_i32_0 = arith.constant 0 : i32
    %c0_i32_1 = arith.constant 0 : i32
    return %c0_i32, %c0_i32_0 : i32, i32
  }
  func.func @transform_3(%arg0: i32) -> (i32, i32) {
    %c0_i32 = arith.constant 0 : i32
    %c0_i32_0 = arith.constant 0 : i32
    %c0_i32_1 = arith.constant 0 : i32
    return %c0_i32, %c0_i32_0 : i32, i32
  }
  func.func @transform_4(%arg0: i32) -> (i32, i32) {
    %c0_i32 = arith.constant 0 : i32
    %c0_i32_0 = arith.constant 0 : i32
    %c0_i32_1 = arith.constant 0 : i32
    return %c0_i32, %c0_i32_0 : i32, i32
  }
  func.func @transform_5(%arg0: i32) -> (i32, i32) {
    %c0_i32 = arith.constant 0 : i32
    %c0_i32_0 = arith.constant 0 : i32
    %c0_i32_1 = arith.constant 0 : i32
    return %c0_i32, %c0_i32_0 : i32, i32
  }
  func.func @transform_6(%arg0: i32) -> (i32, i32) {
    %c0_i32 = arith.constant 0 : i32
    %c0_i32_0 = arith.constant 0 : i32
    %c0_i32_1 = arith.constant 0 : i32
    return %c0_i32, %c0_i32_0 : i32, i32
  }
  func.func @transform_7(%arg0: i32) -> (i32, i32) {
    %c0_i32 = arith.constant 0 : i32
    %c0_i32_0 = arith.constant 0 : i32
    return %arg0, %c0_i32 : i32, i32
  }
}

</mosaic_0001>

<bundles_post_ra>
// kernel: tpu_custom_call.1
= control target key start
LH: loop header
LB: loop body
LE: loop exit
PB: predicated region body
PF: predicated region fallthrough
CT: control target
= control target key end

     0   :  { %s3340_s0 = inlined_call_operand.hbm [shape: bf16[512,256], index: 0, kind: input, shape index: {}]   ;;  %s3341_s1 = inlined_call_operand.hbm [shape: bf16[256,128], index: 1, kind: input, shape index: {}]   ;;  %s3342_s2 = inlined_call_operand.vmem [shape: f32[1,128], index: 2, kind: input, shape index: {}]   ;;  %s3343_s3 = inlined_call_operand.hbm [shape: bf16[128,128], index: 3, kind: input, shape index: {}]   ;;  %s3344_s4 = inlined_call_operand.hbm [shape: f32[1,128], index: 4, kind: input, shape index: {}]   ;;  %s3345_s5 = inlined_call_operand.hbm [shape: bf16[128,256], index: 5, kind: input, shape index: {}]   ;;  %s3346_s6 = inlined_call_operand.vmem [shape: f32[1,256], index: 6, kind: input, shape index: {}]   ;;  %s3347_s7 = inlined_call_operand.hbm [shape: f32[512,256], index: 7, kind: output, shape index: {}]  }
   0x1   :  { %3350 = sst [smem:[#allocation16_spill]] %s3341_s1 }
   0x2   :  { %12 = vsyncpa [#allocation3], 0 }
   0x3   :  { %14 = vsyncpa [#allocation3 + $0x1], 0 }
   0x4   :  { %15 = vsyncpa [#allocation6], 0 }
   0x5   :  { %16 = vsyncpa [#allocation9], 0 }
   0x6   :  { %17 = vsyncpa [#allocation4], 0 }
   0x7   :  { %19 = vsyncpa [#allocation4 + $0x1], 0  ;;  %s2688_s24 = smov 0   ;;  %s2690_s25 = smov 0  }
   0x8   :  { %s2692_s26 = smov 0   ;;  %s2694_s27 = smov 0  }
   0x9 LB: > { %s2709_s28 = sadd.s32 4294967295, %s2636_s27   ;;  %s1825_s29 = sadd.s32 4294967294, %s2636_s27   ;;  %s2636_s27 = sphi %s2694_s27, %s3395_s27   ;;  %s2632_s26 = sphi %s2692_s26, %s3394_s26   ;;  %s2628_s25 = sphi %s2690_s25, %s3393_s25   ;;  %s2624_s24 = sphi %s2688_s24, %s3392_s24  }
   0xa   : > { %p45_p0 = scmp.ne.s32.totalorder %s2628_s25, %s2624_s24  ;;  %p46_p1 = scmp.eq.s32.totalorder %s2709_s28, 0 }
   0xb   : > { %p195_p2 = scmp.eq.s32.totalorder %s2709_s28, 3  ;;  %p201_p3 = scmp.eq.s32.totalorder %s1825_s29, 3 }
   0xc   : > { %p2718_p4 = por %p46_p1, %p45_p0  ;;  %p1826_p5 = scmp.ge.s32.totalorder %s2636_s27, 1 }
   0xd   : > { %p2723_p6 = por %p201_p3, %p45_p0  ;;  %p208_p7 = scmp.lt.s32.totalorder %s2636_s27, 5 }
   0xe   : > { %s3353_s1 = sld [smem:[#allocation16_spill]]  ;;  %s2638_s13 = smov [#allocation5]  }
   0xf   : > { %p2731_p8 = pnand %p1826_p5, %p208_p7  ;;  %s221_s14 = sshll.u32 %s2638_s13, 4  ;;  %s222_s14 = int_to_ptr.vmem [resolvable:$true] %s221_s14 }
  0x10   : > { %s251_s18 = sshll.u32 %s3344_s4, 4  ;;  %s2639_s19 = smov 64   ;;  %s252_s18 = int_to_ptr.hbm [resolvable:$true] %s251_s18 }
  0x11   : > { %p2209_p9 = pneg %p2731_p8  ;;  %s2640_s20 = smov 4  }
  0x12   : > { %s2641_s21 = smov [#allocation8]   ;;  %s236_s9 = sshll.u32 %s3343_s3, 4  ;;  %s237_s9 = int_to_ptr.hbm [resolvable:$true] %s236_s9 }
  0x13   : > { %p2739_p10 = pnand %p2209_p9, %p46_p1  ;;  %s253_s22 = sshll.u32 %s2641_s21, 4  ;;  %s254_s22 = int_to_ptr.vmem [resolvable:$true] %s253_s22 }
  0x14   : > { %s219_s11 = sshll.u32 %s3353_s1, 4  ;;  %s262_s16 = sshll.u32 %s3345_s5, 4  ;;  %s220_s11 = int_to_ptr.hbm [resolvable:$true] %s219_s11  ;;  %s263_s16 = int_to_ptr.hbm [resolvable:$true] %s262_s16 }
  0x15   : > { %2212 = dma.hbm_to_vmem [thread:$0]  (!%p2739_p10), %s220_s11, 2048, %s222_s14, [#allocation6], %s2639_s19, %s2639_s19, %s2640_s20  }
  0x16   : > { %2218 = dma.hbm_to_vmem [thread:$0]  (!%p2739_p10), %s252_s18, 16, %s254_s22, [#allocation9]  }
  0x17   : > { %s2642_s11 = smov [#allocation7]   ;;  %s2643_s17 = smov [#allocation10]  }
  0x18   : > { %s238_s14 = sshll.u32 %s2642_s11, 4  ;;  %s264_s18 = sshll.u32 %s2643_s17, 4  ;;  %s239_s14 = int_to_ptr.vmem [resolvable:$true] %s238_s14  ;;  %s265_s18 = int_to_ptr.vmem [resolvable:$true] %s264_s18 }
  0x19   : > { %2215 = dma.hbm_to_vmem [thread:$0]  (!%p2739_p10), %s237_s9, 1024, %s239_s14, [#allocation6], %s2639_s19, %s2639_s19, %s2640_s20  }
  0x1a   : > { %s3348_s21 = smov 128   ;;  %s3349_s22 = smov 8  }
  0x1b   : > { %2221 = dma.hbm_to_vmem [thread:$0]  (!%p2739_p10), %s263_s16, 2048, %s265_s18, [#allocation9], %s3348_s21, %s3348_s21, %s3349_s22  }
  0x1c   : > { %s2764_s23 = sadd.s32 1, %s2636_s27   ;;  %s32_s10 = sadd.s32 1, %s2632_s26 }
  0x1d   : > { %s29_s29 = ssub.s32 %s2636_s27, %s2764_s23  ;;  %p39_p12 = scmp.ne.s32.totalorder %s2632_s26, %s2628_s25 }
  0x1e   : > { %p30_p11 = scmp.eq.s32.totalorder %s29_s29, 0  ;;  %p40_p13 = scmp.eq.s32.totalorder %s2636_s27, 0 }
  0x1f   : > { %p2777_p3 = por %p195_p2, %p39_p12  ;;  %p2234_p5 = scmp.lt.s32.totalorder %s2636_s27, 4 }
  0x20   : > { %s2773_s19 = scalar_select %p30_p11, %s2632_s26, %s32_s10  }
  0x21   : > { %p41_p0 = por %p40_p13, %p39_p12  ;;  %s281_s15 = sand.u32 1, %s2632_s26  }
  0x22   : > { %s1832_s9 = sshll.u32 %s281_s15, 7  ;;  %s2106_s13 = sshll.u32 %s2636_s27, 7 }
  0x23   : > { %s291_s14 = scalar_lea.hbm %s3340_s0, %s2106_s13  ;;  %s285_s17 = scalar_lea.vmem [#allocation2], %s1832_s9 }
  0x24   : > { %s294_s18 = sshll.u32 %s285_s17, 4  ;;  %s292_s29 = sshll.u32 %s291_s14, 4  ;;  %s295_s18 = int_to_ptr.vmem [resolvable:$true] %s294_s18  ;;  %s293_s29 = int_to_ptr.hbm [resolvable:$true] %s292_s29 }
  0x25   : > { %p2787_p7 = pnand %p2234_p5, %p41_p0  ;;  %s282_s21 = scalar_lea.sflag [#allocation3], %s281_s15 }
  0x26   : > { %s2532_s22 = sshra.s32 %s293_s29, 4  ;;  %s2539_s16 = scalar_lea.hbm %s3340_s0, 512  ;;  %s2533_s22 = int_to_ptr.hbm [resolvable:$true] %s2532_s22 }
  0x27   : > { %s2534_s1 = scalar_lea.hbm %s2533_s22, 128  ;;  %p2536_p9 = pneg %p2787_p7 }
  0x28   : > { %p2535_p2 = scmp.ne.s32.totalorder %s2533_s22, %s2534_s1  ;;  %p2540_p12 = scmp.lt.s32.totalorder %s2533_s22, %s3340_s0 }
  0x29   : > { %p2541_p13 = scmp.lt.s32.totalorder %s2539_s16, %s2534_s1 }
  0x2a   : > { %p2537_p10 = pnand %p2536_p9, %p2535_p2 }
  0x2b   : > { %p2542_p0 = por %p2541_p13, %p2540_p12 }
  0x2c   : > { %p2538_p11 = pneg %p2537_p10 }
  0x2e   : > { %p2543_p5 = pnand %p2542_p0, %p2538_p11 }
  0x30   : > { %2546 = shalt.err (!%p2543_p5)
}
  0x31   : > { %s3358_s15 = smov 8   ;;  %s3359_s17 = smov 128  }
  0x32   : > { %2225 = dma.hbm_to_vmem [thread:$0]  (!%p2787_p7), %s293_s29, 2048, %s295_s18, %s282_s21, %s3359_s17, %s3359_s17, %s3358_s15  }
  0x33   : > { %306 = sbr.rel (%p2731_p8) target bundleno = 705 (0x2c1), region = 48  ;;  %s2807_s13 = sand.u32 (!%p2731_p8), 1, %s2628_s25  }
  0x34   : > { %s1837_s22 = sshll.u32 (!%p2731_p8), %s2807_s13, 7  ;;  %s309_s1 = scalar_lea.sflag (!%p2731_p8), [#allocation3], %s2807_s13 }
  0x35   : > { %s2811_s9 = scalar_lea.vmem (!%p2731_p8), [#allocation2], %s1837_s22 }
  0x38   : > { %2607 = dma.done.wait (%p2718_p4), %s309_s1, 2048  }
  0x39   : > { %2609 = vsyncadd (%p2718_p4), %s309_s1, 4294965248 }
  0x3a   : > { %2611 = dma.done.wait (%p46_p1), [#allocation6], 3072  }
  0x3b   : > { %2613 = vsyncadd (%p46_p1), [#allocation6], 4294964224 }
  0x3c   : > { %2615 = dma.done.wait (%p46_p1), [#allocation9], 2064  }
  0x3d   : > { %2617 = vsyncadd (%p46_p1), [#allocation9], 4294965232  ;;  %v2130_v0 = vld [vmem:[#allocation5 + $0x38] sm:$0xff]  ;;  %v2129_v1 = vld [vmem:[#allocation5 + $0x30] sm:$0xff]  ;;  %s1842_s29 = sshll.u32 %s2807_s13, 8  ;;  %s2164_s16 = sshll.u32 %s2709_s28, 8 }
  0x3e   : > { %2165 = vmatpush.bf16.msra.mxu1 %v2130_v0  ;;  %594 = vmatpush.bf16.msra.mxu0 %v2130_v0  ;;  %v2128_v2 = vld [vmem:[#allocation5 + $0x28] sm:$0xff]  ;;  %v2127_v3 = vld [vmem:[#allocation5 + $0x20] sm:$0xff]  ;;  %v2126_v4 = vld [vmem:[#allocation5 + $0x18] sm:$0xff]  ;;  %s2920_s10 = scalar_lea.vmem [#allocation11], %s1842_s29  ;;  %s3303_s15 = scalar_lea.hbm %s3347_s7, %s2164_s16 }
  0x3f   : > { %2166 = vmatpush.bf16.msra.mxu2 %v2130_v0  ;;  %2167 = vmatpush.bf16.msra.mxu3 %v2130_v0  ;;  %v2125_v5 = vld [vmem:[#allocation5 + $0x10] sm:$0xff]  ;;  %v2124_v6 = vld [vmem:[#allocation5 + $0x8] sm:$0xff]  ;;  %v2123_v7 = vld [vmem:[#allocation5] sm:$0xff]  ;;  %s1711_s28 = sshll.u32 %s2920_s10, 4  ;;  %s1713_s17 = sshll.u32 %s3303_s15, 4  ;;  %s1712_s28 = int_to_ptr.vmem [resolvable:$true] %s1711_s28  ;;  %s1714_s17 = int_to_ptr.hbm [resolvable:$true] %s1713_s17 }
  0x40   : > { %v1861_v8 = vld [vmem:[%s2811_s9 + $0x20] sm:$0xf]  ;;  %v2112_v9 = vld [vmem:[%s2811_s9 + $0x24] sm:$0xf0]  ;;  %v2138_v12 = vld [vmem:[#allocation5 + $0x78] sm:$0xff]  ;;  %s1698_s22 = scalar_lea.sflag [#allocation4], %s2807_s13 }
  0x41   : > { %v1845_v10 = vld [vmem:[%s2811_s9] sm:$0xf]  ;;  %v2108_v11 = vld [vmem:[%s2811_s9 + $0x4] sm:$0xf0]  ;;  %v1862_v13 = vor.u32 %v2112_v9, %v1861_v8  ;;  %v2137_v15 = vld [vmem:[#allocation5 + $0x70] sm:$0xff]  ;;  %s2576_s1 = sshra.s32 %s1714_s17, 4  ;;  %s2577_s1 = int_to_ptr.hbm [resolvable:$true] %s2576_s1 }
  0x42   : > { %2168 = vmatpush.bf16.msra.mxu1 %v2129_v1  ;;  %595 = vmatpush.bf16.msra.mxu0 %v2129_v1  ;;  %v1846_v14 = vor.u32 %v2108_v11, %v1845_v10  ;;  %v2136_v16 = vld [vmem:[#allocation5 + $0x68] sm:$0xff]  ;;  %v2135_v17 = vld [vmem:[#allocation5 + $0x60] sm:$0xff]  ;;  %v1869_v18 = vld [vmem:[%s2811_s9 + $0x30] sm:$0xf]  ;;  %s2582_s21 = scalar_lea.hbm %s3347_s7, 1024  ;;  %p2583_p7 = scmp.lt.s32.totalorder %s2577_s1, %s3347_s7 }
  0x43   : > { %2169 = vmatpush.bf16.msra.mxu2 %v2129_v1  ;;  %2170 = vmatpush.bf16.msra.mxu3 %v2129_v1  ;;  %v2114_v19 = vld [vmem:[%s2811_s9 + $0x34] sm:$0xf0]  ;;  %v1853_v20 = vld [vmem:[%s2811_s9 + $0x10] sm:$0xf]  ;;  %v2132_v26 = vld [vmem:[#allocation5 + $0x48] sm:$0xff] }
  0x44   : > { %v2110_v21 = vld [vmem:[%s2811_s9 + $0x14] sm:$0xf0]  ;;  %v1870_v23 = vor.u32 %v2114_v19, %v1869_v18  ;;  %v2133_v25 = vld [vmem:[#allocation5 + $0x50] sm:$0xff]  ;;  %v2131_v27 = vld [vmem:[#allocation5 + $0x40] sm:$0xff] }
  0x45   : > { %v2134_v22 = vld [vmem:[#allocation5 + $0x58] sm:$0xff]  ;;  %v1854_v24 = vor.u32 %v2110_v21, %v1853_v20  ;;  %v2107_v28 = vld [vmem:[%s2811_s9 + $0x4] sm:$0xf]  ;;  %v1847_v29 = vld [vmem:[%s2811_s9 + $0x8] sm:$0xf0] }
  0x46   : > { %2171 = vmatpush.bf16.msra.mxu1 %v2128_v2  ;;  %596 = vmatpush.bf16.msra.mxu0 %v2128_v2  ;;  %v1850_v30 = vor.u32 %v2107_v28, %v1847_v29  ;;  %v1877_v31 = vld [vmem:[%s2811_s9 + $0x40] sm:$0xf]  ;;  %v2116_v32 = vld [vmem:[%s2811_s9 + $0x44] sm:$0xf0]  ;;  %v2109_v34 = vld [vmem:[%s2811_s9 + $0x14] sm:$0xf] }
  0x47   : > { %2172 = vmatpush.bf16.msra.mxu2 %v2128_v2  ;;  %2173 = vmatpush.bf16.msra.mxu3 %v2128_v2  ;;  %v1878_v33 = vor.u32 %v2116_v32, %v1877_v31  ;;  %v1855_v35 = vld [vmem:[%s2811_s9 + $0x18] sm:$0xf0]  ;;  %v1885_v37 = vld [vmem:[%s2811_s9 + $0x50] sm:$0xf]  ;;  %v2118_v38 = vld [vmem:[%s2811_s9 + $0x54] sm:$0xf0] }
  0x48   : > { %v1858_v36 = vor.u32 %v2109_v34, %v1855_v35  ;;  %v1886_v39 = vor.u32 %v2118_v38, %v1885_v37  ;;  %v2111_v40 = vld [vmem:[%s2811_s9 + $0x24] sm:$0xf]  ;;  %v1863_v41 = vld [vmem:[%s2811_s9 + $0x28] sm:$0xf0]  ;;  %v1893_v43 = vld [vmem:[%s2811_s9 + $0x60] sm:$0xf] }
  0x49   : > { %v1866_v42 = vor.u32 %v2111_v40, %v1863_v41  ;;  %v2120_v44 = vld [vmem:[%s2811_s9 + $0x64] sm:$0xf0]  ;;  %v2113_v46 = vld [vmem:[%s2811_s9 + $0x34] sm:$0xf]  ;;  %v1871_v47 = vld [vmem:[%s2811_s9 + $0x38] sm:$0xf0] }
  0x4a   : > { %2174 = vmatpush.bf16.msra.mxu1 %v2127_v3  ;;  %597 = vmatpush.bf16.msra.mxu0 %v2127_v3  ;;  %v1894_v45 = vor.u32 %v2120_v44, %v1893_v43  ;;  %v1874_v48 = vor.u32 %v2113_v46, %v1871_v47  ;;  %v2115_v49 = vld [vmem:[%s2811_s9 + $0x44] sm:$0xf]  ;;  %v1879_v50 = vld [vmem:[%s2811_s9 + $0x48] sm:$0xf0]  ;;  %v1901_v52 = vld [vmem:[%s2811_s9 + $0x70] sm:$0xf] }
  0x4b   : > { %2175 = vmatpush.bf16.msra.mxu2 %v2127_v3  ;;  %2176 = vmatpush.bf16.msra.mxu3 %v2127_v3  ;;  %v1882_v51 = vor.u32 %v2115_v49, %v1879_v50  ;;  %v2122_v53 = vld [vmem:[%s2811_s9 + $0x74] sm:$0xf0]  ;;  %v2117_v56 = vld [vmem:[%s2811_s9 + $0x54] sm:$0xf]  ;;  %v1887_v57 = vld [vmem:[%s2811_s9 + $0x58] sm:$0xf0] }
  0x4c   : > { %v1902_v54 = vor.u32 %v2122_v53, %v1901_v52  ;;  %v2146_v55 = vld [vmem:[#allocation7 + $0x38] sm:$0xff]  ;;  %v1890_v58 = vor.u32 %v2117_v56, %v1887_v57  ;;  %v2145_v59 = vld [vmem:[#allocation7 + $0x30] sm:$0xff]  ;;  %v2144_v60 = vld [vmem:[#allocation7 + $0x28] sm:$0xff] }
  0x4d   : > { %v2143_v61 = vld [vmem:[#allocation7 + $0x20] sm:$0xff]  ;;  %v1895_v63 = vld [vmem:[%s2811_s9 + $0x68] sm:$0xf0]  ;;  %v2142_v0 = vld [vmem:[#allocation7 + $0x18] sm:$0xff] }
  0x4e   : > { %2177 = vmatpush.bf16.msra.mxu1 %v2126_v4  ;;  %598 = vmatpush.bf16.msra.mxu0 %v2126_v4  ;;  %v2119_v62 = vld [vmem:[%s2811_s9 + $0x64] sm:$0xf]  ;;  %v2141_v3 = vld [vmem:[#allocation7 + $0x10] sm:$0xff]  ;;  %v1903_v8 = vld [vmem:[%s2811_s9 + $0x78] sm:$0xf0] }
  0x4f   : > { %2178 = vmatpush.bf16.msra.mxu2 %v2126_v4  ;;  %2179 = vmatpush.bf16.msra.mxu3 %v2126_v4  ;;  %v1898_v1 = vor.u32 %v2119_v62, %v1895_v63  ;;  %v2140_v4 = vld [vmem:[#allocation7 + $0x8] sm:$0xff] }
  0x52   : > { %2180 = vmatpush.bf16.msra.mxu1 %v2125_v5  ;;  %599 = vmatpush.bf16.msra.mxu0 %v2125_v5 }
  0x53   : > { %2181 = vmatpush.bf16.msra.mxu2 %v2125_v5  ;;  %2182 = vmatpush.bf16.msra.mxu3 %v2125_v5 }
  0x56   : > { %2183 = vmatpush.bf16.msra.mxu1 %v2124_v6  ;;  %600 = vmatpush.bf16.msra.mxu0 %v2124_v6 }
  0x57   : > { %2184 = vmatpush.bf16.msra.mxu2 %v2124_v6  ;;  %2185 = vmatpush.bf16.msra.mxu3 %v2124_v6  ;;  %v2139_v6 = vld [vmem:[#allocation7] sm:$0xff] }
  0x5a   : > { %2186 = vmatpush.bf16.msra.mxu1 %v2123_v7  ;;  %601 = vmatpush.bf16.msra.mxu0 %v2123_v7 }
  0x5b   : > { %2187 = vmatpush.bf16.msra.mxu2 %v2123_v7  ;;  %2188 = vmatpush.bf16.msra.mxu3 %v2123_v7  ;;  %v2121_v7 = vld [vmem:[%s2811_s9 + $0x74] sm:$0xf]  ;;  %s2578_s9 = scalar_lea.hbm %s2577_s1, 256 }
  0x5c   : > { %v1906_v9 = vor.u32 %v2121_v7, %v1903_v8  ;;  %p2579_p1 = scmp.ne.s32.totalorder %s2577_s1, %s2578_s9  ;;  %p2584_p2 = scmp.lt.s32.totalorder %s2582_s21, %s2578_s9 }
  0x5d   : > { %612 = vmatmul.bf16.vlgmr.msra.gmra.mxu1 %v1862_v13  ;;  %602 = vmatmul.bf16.vlgmr.msra.gmra.mxu0 %v1846_v14 }
  0x5e   : > { %643 = vmatpush.bf16.msrb.mxu1 %v2138_v12  ;;  %622 = vmatmul.bf16.vlgmr.msra.gmra.mxu2 %v1878_v33  ;;  %p2580_p4 = pnand %p2579_p1, %p2777_p3  ;;  %p2585_p9 = por %p2584_p2, %p2583_p7 }
  0x5f   : > { %632 = vmatmul.bf16.vlgmr.msra.gmra.mxu3 %v1894_v45  ;;  %784 = vmatpush.bf16.msrb.mxu2 %v2146_v55 }
  0x60   : > { %p2581_p8 = pneg %p2580_p4 }
  0x62   : > { %644 = vmatpush.bf16.msrb.mxu1 %v2137_v15  ;;  %v2860_v15 = vld [vmem:[%s3342_s2] ss:$0 sm:$0xff]  ;;  %p2586_p10 = pnand %p2585_p9, %p2581_p8 }
  0x63   : > { %785 = vmatpush.bf16.msrb.mxu2 %v2145_v59 }
  0x66   : > { %645 = vmatpush.bf16.msrb.mxu1 %v2136_v16 }
  0x67   : > { %786 = vmatpush.bf16.msrb.mxu2 %v2144_v60 }
  0x6a   : > { %646 = vmatpush.bf16.msrb.mxu1 %v2135_v17 }
  0x6b   : > { %787 = vmatpush.bf16.msrb.mxu2 %v2143_v61 }
  0x6d   : > { %617 = vmatmul.bf16.gmra.mxu1 %v1870_v23  ;;  %607 = vmatmul.bf16.gmra.mxu0 %v1854_v24 }
  0x6e   : > { %647 = vmatpush.bf16.msrb.mxu1 %v2134_v22  ;;  %627 = vmatmul.bf16.gmra.mxu2 %v1886_v39 }
  0x6f   : > { %637 = vmatmul.bf16.gmra.mxu3 %v1902_v54  ;;  %788 = vmatpush.bf16.msrb.mxu2 %v2142_v0 }
  0x72   : > { %648 = vmatpush.bf16.msrb.mxu1 %v2133_v25 }
  0x73   : > { %789 = vmatpush.bf16.msrb.mxu2 %v2141_v3 }
  0x76   : > { %649 = vmatpush.bf16.msrb.mxu1 %v2132_v26 }
  0x77   : > { %790 = vmatpush.bf16.msrb.mxu2 %v2140_v4 }
  0x7a   : > { %650 = vmatpush.bf16.msrb.mxu1 %v2131_v27 }
  0x7b   : > { %791 = vmatpush.bf16.msrb.mxu2 %v2139_v6 }
  0x7d   : > { %651 = vmatmul.bf16.vlgmr.msrb.gmra.mxu1 %v1850_v30 }
  0x8d   : > { %656 = vmatmul.bf16.gmra.mxu1 %v1858_v36 }
  0x9d   : > { %661 = vmatmul.bf16.gmra.mxu1 %v1866_v42 }
  0xad   : > { %666 = vmatmul.bf16.gmra.mxu1 %v1874_v48 }
  0xbd   : > { %671 = vmatmul.bf16.gmra.mxu1 %v1882_v51 }
  0xcd   : > { %676 = vmatmul.bf16.gmra.mxu1 %v1890_v58 }
  0xda   : > { %v613_v2 = vpop.f32.mrf.mxu1  ;;  %v603_v11 = vpop.f32.mrf.mxu0 }
  0xdb   : > { %v604_v16 = vadd.f32 %v2860_v15, %v603_v11  ;;  %v614_v36 = vadd.f32 %v2860_v15, %v613_v2 }
  0xdd   : > { %681 = vmatmul.bf16.gmra.mxu1 %v1898_v1 }
  0xe1   : > { %v623_v46 = vpop.f32.mrf.mxu2 }
  0xe2   : > { %v615_v5 = vpop.f32.mrf.mxu1  ;;  %v605_v13 = vpop.f32.mrf.mxu0  ;;  %v624_v56 = vadd.f32 %v2860_v15, %v623_v46 }
  0xe3   : > { %v606_v17 = vadd.f32 %v2860_v15, %v605_v13  ;;  %v616_v37 = vadd.f32 %v2860_v15, %v615_v5  ;;  %v633_v4 = vpop.f32.mrf.mxu3  ;;  %v2162_v13 = vld [vmem:[#allocation10 + $0x74] sm:$0xf0] }
  0xe9   : > { %v625_v54 = vpop.f32.mrf.mxu2 }
  0xea   : > { %v618_v10 = vpop.f32.mrf.mxu1  ;;  %v608_v21 = vpop.f32.mrf.mxu0  ;;  %v626_v57 = vadd.f32 %v2860_v15, %v625_v54 }
  0xeb   : > { %v609_v26 = vadd.f32 %v2860_v15, %v608_v21  ;;  %v619_v45 = vadd.f32 %v2860_v15, %v618_v10  ;;  %v2160_v21 = vld [vmem:[#allocation10 + $0x64] sm:$0xf0] }
  0xed   : > { %686 = vmatmul.bf16.gmra.mxu1 %v1906_v9 }
  0xf1   : > { %v628_v61 = vpop.f32.mrf.mxu2 }
  0xf2   : > { %v620_v12 = vpop.f32.mrf.mxu1  ;;  %v610_v27 = vpop.f32.mrf.mxu0  ;;  %v629_v2 = vadd.f32 %v2860_v15, %v628_v61  ;;  %v2023_v61 = vld [vmem:[#allocation10 + $0x28] sm:$0xf0] }
  0xf3   : > { %v611_v28 = vadd.f32 %v2860_v15, %v610_v27  ;;  %v621_v47 = vadd.f32 %v2860_v15, %v620_v12  ;;  %v2061_v12 = vld [vmem:[#allocation10 + $0x70] sm:$0xf] }
  0xf9   : > { %v630_v3 = vpop.f32.mrf.mxu2 }
  0xfa   : > { %v652_v14 = vpop.f32.mrf.mxu1  ;;  %v631_v5 = vadd.f32 %v2860_v15, %v630_v3 }
  0xfb   : > { %v653_v18 = vadd.f32 %v652_v14, %v604_v16  ;;  %v2161_v14 = vld [vmem:[#allocation10 + $0x74] sm:$0xf]  ;;  %v635_v16 = vpop.f32.mrf.mxu3 }
  0xfd   : > { %v692_v22 = vmax.f32 %v653_v18, 0.0  ;;  %v2062_v18 = vor.u32 %v2162_v13, %v2061_v12  ;;  %v2148_v12 = vld [vmem:[#allocation10 + $0x4] sm:$0xf0] }
  0xff   : > { %959 = vmatpush.bf16.msrb.mxu3 %v2062_v18 }
 0x102   : > { %v654_v19 = vpop.f32.mrf.mxu1 }
 0x103   : > { %v655_v20 = vadd.f32 %v654_v19, %v606_v17  ;;  %v2063_v19 = vld [vmem:[#allocation10 + $0x78] sm:$0xf0] }
 0x105   : > { %v693_v23 = vmax.f32 %v655_v20, 0.0  ;;  %v2053_v20 = vld [vmem:[#allocation10 + $0x60] sm:$0xf] }
 0x107   : > { %v708_v24 = vpack.c.bf16 %v693_v23, %v692_v22  ;;  %v2066_v22 = vor.u32 %v2161_v14, %v2063_v19  ;;  %v2159_v23 = vld [vmem:[#allocation10 + $0x64] sm:$0xf]  ;;  %v2878_v19 = vld [vmem:[#allocation8] ss:$0 sm:$0xff] }
 0x108   : > { %v2147_v14 = vld [vmem:[#allocation10 + $0x4] sm:$0xf] }
 0x109   : > { %792 = vmatmul.bf16.vlgmr.msrb.gmra.mxu2 %v708_v24  ;;  %v2055_v24 = vld [vmem:[#allocation10 + $0x68] sm:$0xf0]  ;;  %1008 = vmatpush.bf16.msrb.mxu0 %v2066_v22 }
 0x10a   : > { %v657_v25 = vpop.f32.mrf.mxu1  ;;  %v2058_v27 = vor.u32 %v2159_v23, %v2055_v24 }
 0x10b   : > { %v658_v29 = vadd.f32 %v657_v25, %v609_v26  ;;  %v2054_v25 = vor.u32 %v2160_v21, %v2053_v20  ;;  %v634_v26 = vadd.f32 %v2860_v15, %v633_v4  ;;  %v2149_v4 = vld [vmem:[#allocation10 + $0x14] sm:$0xf] }
 0x10d   : > { %v694_v32 = vmax.f32 %v658_v29, 0.0  ;;  %v2158_v29 = vld [vmem:[#allocation10 + $0x54] sm:$0xf0]  ;;  %960 = vmatpush.bf16.msrb.mxu3 %v2054_v25  ;;  %1009 = vmatpush.bf16.msrb.mxu0 %v2058_v27 }
 0x112   : > { %v659_v30 = vpop.f32.mrf.mxu1 }
 0x113   : > { %v660_v31 = vadd.f32 %v659_v30, %v611_v28  ;;  %v2045_v28 = vld [vmem:[#allocation10 + $0x50] sm:$0xf]  ;;  %v2157_v30 = vld [vmem:[#allocation10 + $0x54] sm:$0xf] }
 0x115   : > { %v695_v33 = vmax.f32 %v660_v31, 0.0  ;;  %v2047_v31 = vld [vmem:[#allocation10 + $0x58] sm:$0xf0] }
 0x117   : > { %v709_v34 = vpack.c.bf16 %v695_v33, %v694_v32  ;;  %v2046_v32 = vor.u32 %v2158_v29, %v2045_v28  ;;  %v636_v33 = vadd.f32 %v2860_v15, %v635_v16  ;;  %v2007_v16 = vld [vmem:[#allocation10 + $0x8] sm:$0xf0] }
 0x118   : > { %v2010_v18 = vor.u32 %v2147_v14, %v2007_v16 }
 0x119   : > { %797 = vmatmul.bf16.gmra.mxu2 %v709_v34  ;;  %961 = vmatpush.bf16.msrb.mxu3 %v2046_v32 }
 0x11a   : > { %v662_v35 = vpop.f32.mrf.mxu1 }
 0x11b   : > { %v663_v38 = vadd.f32 %v662_v35, %v614_v36  ;;  %v2050_v35 = vor.u32 %v2157_v30, %v2047_v31  ;;  %v2037_v36 = vld [vmem:[#allocation10 + $0x40] sm:$0xf] }
 0x11d   : > { %v696_v41 = vmax.f32 %v663_v38, 0.0  ;;  %1010 = vmatpush.bf16.msrb.mxu0 %v2050_v35 }
 0x122   : > { %v664_v39 = vpop.f32.mrf.mxu1 }
 0x123   : > { %v665_v40 = vadd.f32 %v664_v39, %v616_v37  ;;  %v2156_v37 = vld [vmem:[#allocation10 + $0x44] sm:$0xf0]  ;;  %v2155_v39 = vld [vmem:[#allocation10 + $0x44] sm:$0xf] }
 0x125   : > { %v697_v42 = vmax.f32 %v665_v40, 0.0  ;;  %v2039_v40 = vld [vmem:[#allocation10 + $0x48] sm:$0xf0] }
 0x126   : > { %v2042_v46 = vor.u32 %v2155_v39, %v2039_v40 }
 0x127   : > { %v710_v43 = vpack.c.bf16 %v697_v42, %v696_v41  ;;  %v638_v42 = vpop.f32.mrf.mxu3 }
 0x128   : > { %1011 = vmatpush.bf16.msrb.mxu0 %v2042_v46 }
 0x129   : > { %802 = vmatmul.bf16.gmra.mxu2 %v710_v43  ;;  %v2038_v43 = vor.u32 %v2156_v37, %v2037_v36 }
 0x12a   : > { %v667_v44 = vpop.f32.mrf.mxu1 }
 0x12b   : > { %v668_v48 = vadd.f32 %v667_v44, %v619_v45  ;;  %962 = vmatpush.bf16.msrb.mxu3 %v2038_v43 }
 0x12d   : > { %v698_v51 = vmax.f32 %v668_v48, 0.0  ;;  %v2154_v48 = vld [vmem:[#allocation10 + $0x34] sm:$0xf0] }
 0x132   : > { %v669_v49 = vpop.f32.mrf.mxu1 }
 0x133   : > { %v670_v50 = vadd.f32 %v669_v49, %v621_v47  ;;  %v2029_v47 = vld [vmem:[#allocation10 + $0x30] sm:$0xf] }
 0x135   : > { %v699_v52 = vmax.f32 %v670_v50, 0.0  ;;  %v2030_v50 = vor.u32 %v2154_v48, %v2029_v47 }
 0x137   : > { %v711_v53 = vpack.c.bf16 %v699_v52, %v698_v51  ;;  %v2153_v51 = vld [vmem:[#allocation10 + $0x34] sm:$0xf]  ;;  %v2031_v52 = vld [vmem:[#allocation10 + $0x38] sm:$0xf0]  ;;  %963 = vmatpush.bf16.msrb.mxu3 %v2030_v50 }
 0x138   : > { %v2034_v54 = vor.u32 %v2153_v51, %v2031_v52 }
 0x139   : > { %807 = vmatmul.bf16.gmra.mxu2 %v711_v53 }
 0x13a   : > { %v672_v55 = vpop.f32.mrf.mxu1  ;;  %1012 = vmatpush.bf16.msrb.mxu0 %v2034_v54 }
 0x13b   : > { %v673_v58 = vadd.f32 %v672_v55, %v624_v56  ;;  %v639_v55 = vadd.f32 %v2860_v15, %v638_v42  ;;  %v2021_v56 = vld [vmem:[#allocation10 + $0x20] sm:$0xf] }
 0x13d   : > { %v700_v62 = vmax.f32 %v673_v58, 0.0  ;;  %v640_v58 = vpop.f32.mrf.mxu3 }
 0x142   : > { %v674_v59 = vpop.f32.mrf.mxu1 }
 0x143   : > { %v675_v60 = vadd.f32 %v674_v59, %v626_v57  ;;  %v2152_v57 = vld [vmem:[#allocation10 + $0x24] sm:$0xf0] }
 0x144   : > { %v2022_v59 = vor.u32 %v2152_v57, %v2021_v56 }
 0x145   : > { %v701_v63 = vmax.f32 %v675_v60, 0.0  ;;  %v2151_v60 = vld [vmem:[#allocation10 + $0x24] sm:$0xf] }
 0x146   : > { %964 = vmatpush.bf16.msrb.mxu3 %v2022_v59 }
 0x147   : > { %v712_v0 = vpack.c.bf16 %v701_v63, %v700_v62  ;;  %v2026_v62 = vor.u32 %v2151_v60, %v2023_v61  ;;  %v2013_v63 = vld [vmem:[#allocation10 + $0x10] sm:$0xf] }
 0x149   : > { %812 = vmatmul.bf16.gmra.mxu2 %v712_v0  ;;  %v2150_v0 = vld [vmem:[#allocation10 + $0x14] sm:$0xf0]  ;;  %1013 = vmatpush.bf16.msrb.mxu0 %v2026_v62 }
 0x14a   : > { %v677_v1 = vpop.f32.mrf.mxu1 }
 0x14b   : > { %v678_v6 = vadd.f32 %v677_v1, %v629_v2  ;;  %v2014_v1 = vor.u32 %v2150_v0, %v2013_v63  ;;  %v641_v2 = vadd.f32 %v2860_v15, %v640_v58 }
 0x14d   : > { %v702_v9 = vmax.f32 %v678_v6, 0.0  ;;  %965 = vmatpush.bf16.msrb.mxu3 %v2014_v1 }
 0x152   : > { %v679_v7 = vpop.f32.mrf.mxu1 }
 0x153   : > { %v680_v8 = vadd.f32 %v679_v7, %v631_v5  ;;  %v2015_v5 = vld [vmem:[#allocation10 + $0x18] sm:$0xf0] }
 0x154   : > { %v2018_v7 = vor.u32 %v2149_v4, %v2015_v5 }
 0x155   : > { %v703_v10 = vmax.f32 %v680_v8, 0.0 }
 0x156   : > { %1014 = vmatpush.bf16.msrb.mxu0 %v2018_v7 }
 0x157   : > { %v713_v11 = vpack.c.bf16 %v703_v10, %v702_v9 }
 0x159   : > { %817 = vmatmul.bf16.gmra.mxu2 %v713_v11  ;;  %v2005_v11 = vld [vmem:[#allocation10] sm:$0xf] }
 0x15a   : > { %v682_v17 = vpop.f32.mrf.mxu1  ;;  %v2006_v13 = vor.u32 %v2148_v12, %v2005_v11  ;;  %1015 = vmatpush.bf16.msrb.mxu0 %v2010_v18  ;;  %v873_v11 = vld [vmem:[%s3346_s6] sm:$0x3] }
 0x15b   : > { %v683_v34 = vadd.f32 %v682_v17, %v634_v26  ;;  %v2899_v12 = vperm.slane %v873_v11, 1 }
 0x15c   : > { %966 = vmatpush.bf16.msrb.mxu3 %v2006_v13 }
 0x15d   : > { %v704_v44 = vmax.f32 %v683_v34, 0.0 }
 0x162   : > { %v684_v38 = vpop.f32.mrf.mxu1 }
 0x163   : > { %v685_v41 = vadd.f32 %v684_v38, %v636_v33 }
 0x165   : > { %v705_v45 = vmax.f32 %v685_v41, 0.0 }
 0x167   : > { %v714_v49 = vpack.c.bf16 %v705_v45, %v704_v44 }
 0x169   : > { %822 = vmatmul.bf16.gmra.mxu2 %v714_v49 }
 0x16a   : > { %v687_v53 = vpop.f32.mrf.mxu1 }
 0x16b   : > { %v688_v3 = vadd.f32 %v687_v53, %v639_v55 }
 0x16d   : > { %v706_v9 = vmax.f32 %v688_v3, 0.0 }
 0x172   : > { %v689_v6 = vpop.f32.mrf.mxu1 }
 0x173   : > { %v690_v8 = vadd.f32 %v689_v6, %v641_v2 }
 0x175   : > { %v707_v10 = vmax.f32 %v690_v8, 0.0 }
 0x177   : > { %v715_v17 = vpack.c.bf16 %v707_v10, %v706_v9 }
 0x179   : > { %827 = vmatmul.bf16.gmra.mxu2 %v715_v17  ;;  %v2902_v17 = vperm.slane %v873_v11, 0 }
 0x18c   : > { %v793_v15 = vpop.f32.mrf.mxu2 }
 0x18d   : > { %v794_v20 = vadd.f32 %v2878_v19, %v793_v15 }
 0x18f   : > { %v833_v23 = vmax.f32 %v794_v20, 0.0 }
 0x194   : > { %v795_v21 = vpop.f32.mrf.mxu2 }
 0x195   : > { %v796_v22 = vadd.f32 %v2878_v19, %v795_v21 }
 0x197   : > { %v834_v24 = vmax.f32 %v796_v22, 0.0 }
 0x199   : > { %v849_v25 = vpack.c.bf16 %v834_v24, %v833_v23 }
 0x19b   : > { %967 = vmatmul.bf16.vlgmr.msrb.gmra.mxu3 %v849_v25  ;;  %1016 = vmatmul.bf16.vlgmr.msrb.gmra.mxu0 %v849_v25 }
 0x19c   : > { %v798_v26 = vpop.f32.mrf.mxu2 }
 0x19d   : > { %v799_v27 = vadd.f32 %v2878_v19, %v798_v26 }
 0x19f   : > { %v835_v30 = vmax.f32 %v799_v27, 0.0 }
 0x1a4   : > { %v800_v28 = vpop.f32.mrf.mxu2 }
 0x1a5   : > { %v801_v29 = vadd.f32 %v2878_v19, %v800_v28 }
 0x1a7   : > { %v836_v31 = vmax.f32 %v801_v29, 0.0 }
 0x1a9   : > { %v850_v32 = vpack.c.bf16 %v836_v31, %v835_v30 }
 0x1ab   : > { %972 = vmatmul.bf16.gmra.mxu3 %v850_v32  ;;  %1021 = vmatmul.bf16.gmra.mxu0 %v850_v32 }
 0x1ac   : > { %v803_v33 = vpop.f32.mrf.mxu2 }
 0x1ad   : > { %v804_v34 = vadd.f32 %v2878_v19, %v803_v33 }
 0x1af   : > { %v837_v37 = vmax.f32 %v804_v34, 0.0 }
 0x1b4   : > { %v805_v35 = vpop.f32.mrf.mxu2 }
 0x1b5   : > { %v806_v36 = vadd.f32 %v2878_v19, %v805_v35 }
 0x1b7   : > { %v838_v38 = vmax.f32 %v806_v36, 0.0 }
 0x1b9   : > { %v851_v39 = vpack.c.bf16 %v838_v38, %v837_v37 }
 0x1bb   : > { %977 = vmatmul.bf16.gmra.mxu3 %v851_v39  ;;  %1026 = vmatmul.bf16.gmra.mxu0 %v851_v39 }
 0x1bc   : > { %v808_v40 = vpop.f32.mrf.mxu2 }
 0x1bd   : > { %v809_v41 = vadd.f32 %v2878_v19, %v808_v40 }
 0x1bf   : > { %v839_v44 = vmax.f32 %v809_v41, 0.0 }
 0x1c4   : > { %v810_v42 = vpop.f32.mrf.mxu2 }
 0x1c5   : > { %v811_v43 = vadd.f32 %v2878_v19, %v810_v42 }
 0x1c7   : > { %v840_v45 = vmax.f32 %v811_v43, 0.0 }
 0x1c9   : > { %v852_v46 = vpack.c.bf16 %v840_v45, %v839_v44 }
 0x1cb   : > { %982 = vmatmul.bf16.gmra.mxu3 %v852_v46  ;;  %1031 = vmatmul.bf16.gmra.mxu0 %v852_v46 }
 0x1cc   : > { %v813_v47 = vpop.f32.mrf.mxu2 }
 0x1cd   : > { %v814_v48 = vadd.f32 %v2878_v19, %v813_v47 }
 0x1cf   : > { %v841_v51 = vmax.f32 %v814_v48, 0.0 }
 0x1d4   : > { %v815_v49 = vpop.f32.mrf.mxu2 }
 0x1d5   : > { %v816_v50 = vadd.f32 %v2878_v19, %v815_v49 }
 0x1d7   : > { %v842_v52 = vmax.f32 %v816_v50, 0.0 }
 0x1d9   : > { %v853_v53 = vpack.c.bf16 %v842_v52, %v841_v51 }
 0x1db   : > { %987 = vmatmul.bf16.gmra.mxu3 %v853_v53  ;;  %1036 = vmatmul.bf16.gmra.mxu0 %v853_v53 }
 0x1dc   : > { %v818_v54 = vpop.f32.mrf.mxu2 }
 0x1dd   : > { %v819_v55 = vadd.f32 %v2878_v19, %v818_v54 }
 0x1df   : > { %v843_v58 = vmax.f32 %v819_v55, 0.0 }
 0x1e4   : > { %v820_v56 = vpop.f32.mrf.mxu2 }
 0x1e5   : > { %v821_v57 = vadd.f32 %v2878_v19, %v820_v56 }
 0x1e7   : > { %v844_v59 = vmax.f32 %v821_v57, 0.0 }
 0x1e9   : > { %v854_v60 = vpack.c.bf16 %v844_v59, %v843_v58 }
 0x1eb   : > { %992 = vmatmul.bf16.gmra.mxu3 %v854_v60  ;;  %1041 = vmatmul.bf16.gmra.mxu0 %v854_v60 }
 0x1ec   : > { %v823_v61 = vpop.f32.mrf.mxu2 }
 0x1ed   : > { %v824_v62 = vadd.f32 %v2878_v19, %v823_v61 }
 0x1ef   : > { %v845_v1 = vmax.f32 %v824_v62, 0.0 }
 0x1f4   : > { %v825_v63 = vpop.f32.mrf.mxu2 }
 0x1f5   : > { %v826_v0 = vadd.f32 %v2878_v19, %v825_v63 }
 0x1f7   : > { %v846_v2 = vmax.f32 %v826_v0, 0.0 }
 0x1f9   : > { %v855_v3 = vpack.c.bf16 %v846_v2, %v845_v1 }
 0x1fb   : > { %997 = vmatmul.bf16.gmra.mxu3 %v855_v3  ;;  %1046 = vmatmul.bf16.gmra.mxu0 %v855_v3 }
 0x1fc   : > { %v828_v4 = vpop.f32.mrf.mxu2 }
 0x1fd   : > { %v829_v5 = vadd.f32 %v2878_v19, %v828_v4 }
 0x1ff   : > { %v847_v8 = vmax.f32 %v829_v5, 0.0 }
 0x204   : > { %v830_v6 = vpop.f32.mrf.mxu2 }
 0x205   : > { %v831_v7 = vadd.f32 %v2878_v19, %v830_v6 }
 0x207   : > { %v848_v9 = vmax.f32 %v831_v7, 0.0 }
 0x209   : > { %v856_v10 = vpack.c.bf16 %v848_v9, %v847_v8 }
 0x20b   : > { %1002 = vmatmul.bf16.gmra.mxu3 %v856_v10  ;;  %1051 = vmatmul.bf16.gmra.mxu0 %v856_v10 }
 0x218   : > { %v1017_v13 = vpop.f32.mrf.mxu0 }
 0x219   : > { %v1018_v14 = vadd.f32 %v1017_v13, %v2899_v12 }
 0x21b   : > { %v2068_v16 = vmul.f32 -1.442695, %v1018_v14 }
 0x21d   : > { %2284 = vpow2.f32 %v2068_v16 }
 0x21e   : > { %v968_v18 = vpop.f32.mrf.mxu3 }
 0x21f   : > { %v969_v15 = vadd.f32 %v968_v18, %v2902_v17 }
 0x220   : > { %v1019_v19 = vpop.f32.mrf.mxu0 }
 0x221   : > { %v2067_v20 = vmul.f32 -1.442695, %v969_v15  ;;  %v1020_v21 = vadd.f32 %v1019_v19, %v2899_v12 }
 0x223   : > { %v2285_v22 = vpop.eup %2284  ;;  %2286 = vpow2.f32 %v2067_v20  ;;  %v2070_v23 = vmul.f32 -1.442695, %v1020_v21 }
 0x224   : > { %v1154_v24 = vadd.f32 1.0, %v2285_v22 }
 0x225   : > { %2288 = vpow2.f32 %v2070_v23 }
 0x226   : > { %2290 = vrcp.f32 %v1154_v24  ;;  %v970_v25 = vpop.f32.mrf.mxu3  ;;  %v1209_v39 = vand.u32 2147483647, %v1154_v24  ;;  %v1211_v40 = vand.u32 2147483648, %v1154_v24  ;;  %vm1205_vm1 = vweird.f32 %v1154_v24 }
 0x227   : > { %v971_v26 = vadd.f32 %v970_v25, %v2902_v17 }
 0x228   : > { %v1022_v27 = vpop.f32.mrf.mxu0  ;;  %vm1210_vm3 = vcmp.eq.f32.partialorder %v1209_v39, 8.507059e+37  ;;  %v1212_v52 = vor.u32 1.1754944e-38, %v1211_v40 }
 0x229   : > { %v2287_v28 = vpop.eup %2286  ;;  %v2069_v29 = vmul.f32 -1.442695, %v971_v26  ;;  %v1023_v30 = vadd.f32 %v1022_v27, %v2899_v12 }
 0x22a   : > { %v1153_v31 = vadd.f32 1.0, %v2287_v28 }
 0x22b   : > { %v2289_v32 = vpop.eup %2288  ;;  %2292 = vpow2.f32 %v2069_v29  ;;  %v2072_v33 = vmul.f32 -1.442695, %v1023_v30 }
 0x22c   : > { %v2291_v34 = vpop.eup %2290  ;;  %2294 = vrcp.f32 %v1153_v31  ;;  %v2908_v36 = vadd.f32 1.0, %v2289_v32  ;;  %v1194_v59 = vand.u32 2147483647, %v1153_v31  ;;  %v1196_v60 = vand.u32 2147483648, %v1153_v31 }
 0x22d   : > { %v1201_v35 = vmul.f32 %v2291_v34, %v1154_v24  ;;  %2296 = vpow2.f32 %v2072_v33  ;;  %vm1206_vm0 = vweird.f32 %v2291_v34  ;;  %vm1190_vm5 = vweird.f32 %v1153_v31 }
 0x22e   : > { %v973_v37 = vpop.f32.mrf.mxu3  ;;  %2298 = vrcp.f32 %v2908_v36  ;;  %vm1207_vm2 = vmor %vm1205_vm1, %vm1206_vm0  ;;  %v1239_v1 = vand.u32 2147483647, %v2908_v36  ;;  %v1241_v4 = vand.u32 2147483648, %v2908_v36  ;;  %vm1195_vm7 = vcmp.eq.f32.partialorder %v1194_v59, 8.507059e+37 }
 0x22f   : > { %v1202_v38 = vsub.f32 1.0, %v1201_v35  ;;  %v974_v41 = vadd.f32 %v973_v37, %v2902_v17  ;;  %v1197_v8 = vor.u32 1.1754944e-38, %v1196_v60  ;;  %vm1235_vm9 = vweird.f32 %v2908_v36 }
 0x230   : > { %v1024_v42 = vpop.f32.mrf.mxu0  ;;  %vm1240_vm11 = vcmp.eq.f32.partialorder %v1239_v1, 8.507059e+37  ;;  %v1242_v21 = vor.u32 1.1754944e-38, %v1241_v4 }
 0x231   : > { %v2293_v43 = vpop.eup %2292  ;;  %v1203_v44 = vmul.f32 %v2291_v34, %v1202_v38  ;;  %v1025_v45 = vadd.f32 %v1024_v42, %v2899_v12  ;;  %v2071_v48 = vmul.f32 -1.442695, %v974_v41 }
 0x232   : > { %v2295_v46 = vpop.eup %2294  ;;  %v2914_v47 = vadd.f32 1.0, %v2293_v43 }
 0x233   : > { %v2297_v49 = vpop.eup %2296  ;;  %v1204_v50 = vadd.f32 %v2291_v34, %v1203_v44  ;;  %v1186_v51 = vmul.f32 %v2295_v46, %v1153_v31  ;;  %v2074_v53 = vmul.f32 -1.442695, %v1025_v45  ;;  %vm1191_vm4 = vweird.f32 %v2295_v46 }
 0x234   : > { %2300 = vrcp.f32 %v2914_v47  ;;  %v2299_v54 = vpop.eup %2298  ;;  %v2917_v57 = vadd.f32 1.0, %v2297_v49  ;;  %vm1192_vm6 = vmor %vm1190_vm5, %vm1191_vm4  ;;  %v1226_v25 = vand.u32 2147483648, %v2914_v47  ;;  %v1224_v30 = vand.u32 2147483647, %v2914_v47 }
 0x235   : > { %v1208_v55 = vsel %vm1207_vm2, %v2291_v34, %v1204_v50  ;;  %v1187_v56 = vsub.f32 1.0, %v1186_v51  ;;  %2302 = vpow2.f32 %v2071_v48  ;;  %v1231_v61 = vmul.f32 %v2299_v54, %v2908_v36 }
 0x236   : > { %v1213_v58 = vsel %vm1210_vm3, %v1212_v52, %v1208_v55  ;;  %v975_v62 = vpop.f32.mrf.mxu3  ;;  %2304 = vrcp.f32 %v2917_v57  ;;  %vm1236_vm8 = vweird.f32 %v2299_v54  ;;  %vm1220_vm13 = vweird.f32 %v2914_v47 }
 0x237   : > { %1666 = vst [vmem:[%s2920_s10 + $0x8] sm:$0xff] %v1213_v58  ;;  %v1188_v63 = vmul.f32 %v2295_v46, %v1187_v56  ;;  %v1232_v0 = vsub.f32 1.0, %v1231_v61  ;;  %2306 = vpow2.f32 %v2074_v53  ;;  %v976_v5 = vadd.f32 %v975_v62, %v2902_v17  ;;  %vm1237_vm10 = vmor %vm1235_vm9, %vm1236_vm8 }
 0x238   : > { %v1027_v2 = vpop.f32.mrf.mxu0  ;;  %v1269_v35 = vand.u32 2147483647, %v2917_v57  ;;  %v1271_v36 = vand.u32 2147483648, %v2917_v57  ;;  %v1227_v38 = vor.u32 1.1754944e-38, %v1226_v25  ;;  %vm1225_vm0 = vcmp.eq.f32.partialorder %v1224_v30, 8.507059e+37 }
 0x239   : > { %v1189_v3 = vadd.f32 %v2295_v46, %v1188_v63  ;;  %v1028_v6 = vadd.f32 %v1027_v2, %v2899_v12  ;;  %v1233_v9 = vmul.f32 %v2299_v54, %v1232_v0  ;;  %v2073_v14 = vmul.f32 -1.442695, %v976_v5 }
 0x23a   : > { %v2301_v7 = vpop.eup %2300  ;;  %vm1265_vm1 = vweird.f32 %v2917_v57  ;;  %vm1270_vm3 = vcmp.eq.f32.partialorder %v1269_v35, 8.507059e+37  ;;  %v1272_v48 = vor.u32 1.1754944e-38, %v1271_v36 }
 0x23b   : > { %v2303_v10 = vpop.eup %2302  ;;  %v1193_v11 = vsel %vm1192_vm6, %v2295_v46, %v1189_v3  ;;  %v1216_v13 = vmul.f32 %v2301_v7, %v2914_v47  ;;  %v1234_v18 = vadd.f32 %v2299_v54, %v1233_v9  ;;  %v2076_v19 = vmul.f32 -1.442695, %v1028_v6 }
 0x23c   : > { %v1198_v16 = vsel %vm1195_vm7, %v1197_v8, %v1193_v11  ;;  %v2930_v15 = vadd.f32 1.0, %v2303_v10  ;;  %v2305_v20 = vpop.eup %2304  ;;  %2308 = vpow2.f32 %v2073_v14  ;;  %vm1221_vm12 = vweird.f32 %v2301_v7 }
 0x23d   : > { %1665 = vst [vmem:[%s2920_s10] sm:$0xff] %v1198_v16  ;;  %v1217_v22 = vsub.f32 1.0, %v1216_v13  ;;  %v2307_v23 = vpop.eup %2306  ;;  %v1238_v24 = vsel %vm1237_vm10, %v2299_v54, %v1234_v18  ;;  %v1261_v26 = vmul.f32 %v2305_v20, %v2917_v57  ;;  %vm1222_vm14 = vmor %vm1220_vm13, %vm1221_vm12  ;;  %vm1266_vm15 = vweird.f32 %v2305_v20 }
 0x23e   : > { %2310 = vrcp.f32 %v2930_v15  ;;  %v978_v27 = vpop.f32.mrf.mxu3  ;;  %v1243_v28 = vsel %vm1240_vm11, %v1242_v21, %v1238_v24  ;;  %v2939_v32 = vadd.f32 1.0, %v2307_v23  ;;  %vm1267_vm2 = vmor %vm1265_vm1, %vm1266_vm15  ;;  %v1254_v52 = vand.u32 2147483647, %v2930_v15 }
 0x23f   : > { %v1218_v29 = vmul.f32 %v2301_v7, %v1217_v22  ;;  %1668 = vst [vmem:[%s2920_s10 + $0x18] sm:$0xff] %v1243_v28  ;;  %v1262_v31 = vsub.f32 1.0, %v1261_v26  ;;  %2312 = vpow2.f32 %v2076_v19  ;;  %v979_v37 = vadd.f32 %v978_v27, %v2902_v17 }
 0x240   : > { %v1029_v33 = vpop.f32.mrf.mxu0  ;;  %2314 = vrcp.f32 %v2939_v32  ;;  %v1256_v53 = vand.u32 2147483648, %v2930_v15  ;;  %vm1250_vm5 = vweird.f32 %v2930_v15  ;;  %vm2960_vm6 = vcmp.eq.f32.partialorder %v1254_v52, 8.507059e+37 }
 0x241   : > { %v1219_v34 = vadd.f32 %v2301_v7, %v1218_v29  ;;  %v1263_v39 = vmul.f32 %v2305_v20, %v1262_v31  ;;  %v1030_v42 = vadd.f32 %v1029_v33, %v2899_v12  ;;  %v2075_v47 = vmul.f32 -1.442695, %v979_v37 }
 0x242   : > { %v2309_v40 = vpop.eup %2308  ;;  %v1257_v1 = vor.u32 1.1754944e-38, %v1256_v53  ;;  %vm1295_vm8 = vweird.f32 %v2939_v32  ;;  %v1299_v6 = vand.u32 2147483647, %v2939_v32 }
 0x243   : > { %v1223_v41 = vsel %vm1222_vm14, %v2301_v7, %v1219_v34  ;;  %v1264_v45 = vadd.f32 %v2305_v20, %v1263_v39  ;;  %v2947_v46 = vadd.f32 1.0, %v2309_v40  ;;  %v2078_v58 = vmul.f32 -1.442695, %v1030_v42 }
 0x244   : > { %v2311_v43 = vpop.eup %2310  ;;  %v1228_v44 = vsel %vm1225_vm0, %v1227_v38, %v1223_v41  ;;  %v1301_v7 = vand.u32 2147483648, %v2939_v32  ;;  %vm1300_vm11 = vcmp.eq.f32.partialorder %v1299_v6, 8.507059e+37 }
 0x245   : > { %1667 = vst [vmem:[%s2920_s10 + $0x10] sm:$0xff] %v1228_v44  ;;  %v1246_v49 = vmul.f32 %v2311_v43, %v2930_v15  ;;  %v2313_v50 = vpop.eup %2312  ;;  %v1268_v51 = vsel %vm1267_vm2, %v2305_v20, %v1264_v45  ;;  %2316 = vrcp.f32 %v2947_v46  ;;  %vm1251_vm4 = vweird.f32 %v2311_v43 }
 0x246   : > { %v980_v54 = vpop.f32.mrf.mxu3  ;;  %v1273_v55 = vsel %vm1270_vm3, %v1272_v48, %v1268_v51  ;;  %v2954_v57 = vadd.f32 1.0, %v2313_v50  ;;  %v2315_v59 = vpop.eup %2314  ;;  %2318 = vpow2.f32 %v2075_v47  ;;  %vm1252_vm7 = vmor %vm1250_vm5, %vm1251_vm4  ;;  %v1284_v16 = vand.u32 2147483647, %v2947_v46 }
 0x247   : > { %v1247_v56 = vsub.f32 1.0, %v1246_v49  ;;  %1670 = vst [vmem:[%s2920_s10 + $0x28] sm:$0xff] %v1273_v55  ;;  %v981_v60 = vadd.f32 %v980_v54, %v2902_v17  ;;  %v1291_v63 = vmul.f32 %v2315_v59, %v2939_v32  ;;  %vm1296_vm9 = vweird.f32 %v2315_v59 }
 0x248   : > { %v1032_v61 = vpop.f32.mrf.mxu0  ;;  %2320 = vrcp.f32 %v2954_v57  ;;  %v1286_v21 = vand.u32 2147483648, %v2947_v46  ;;  %vm1297_vm10 = vmor %vm1295_vm8, %vm1296_vm9  ;;  %v1302_v24 = vor.u32 1.1754944e-38, %v1301_v7  ;;  %vm1280_vm13 = vweird.f32 %v2947_v46 }
 0x249   : > { %v1248_v62 = vmul.f32 %v2311_v43, %v1247_v56  ;;  %v1292_v3 = vsub.f32 1.0, %v1291_v63  ;;  %2322 = vpow2.f32 %v2078_v58  ;;  %v2077_v4 = vmul.f32 -1.442695, %v981_v60 }
 0x24a   : > { %v1033_v8 = vadd.f32 %v1032_v61, %v2899_v12  ;;  %vm2982_vm14 = vcmp.eq.f32.partialorder %v1284_v16, 8.507059e+37  ;;  %v1287_v34 = vor.u32 1.1754944e-38, %v1286_v21  ;;  %v1329_v38 = vand.u32 2147483647, %v2954_v57 }
 0x24b   : > { %v1249_v2 = vadd.f32 %v2311_v43, %v1248_v62  ;;  %v2317_v5 = vpop.eup %2316  ;;  %v1293_v10 = vmul.f32 %v2315_v59, %v1292_v3  ;;  %2324 = vpow2.f32 %v2077_v4  ;;  %v1331_v39 = vand.u32 2147483648, %v2954_v57 }
 0x24c   : > { %v1276_v11 = vmul.f32 %v2317_v5, %v2947_v46  ;;  %v2319_v13 = vpop.eup %2318  ;;  %v2080_v18 = vmul.f32 -1.442695, %v1033_v8  ;;  %vm1281_vm12 = vweird.f32 %v2317_v5  ;;  %vm1325_vm1 = vweird.f32 %v2954_v57 }
 0x24d   : > { %v1253_v9 = vsel %vm1252_vm7, %v2311_v43, %v1249_v2  ;;  %v1294_v19 = vadd.f32 %v2315_v59, %v1293_v10  ;;  %v2975_v22 = vadd.f32 1.0, %v2319_v13  ;;  %vm1282_vm15 = vmor %vm1280_vm13, %vm1281_vm12  ;;  %vm1330_vm3 = vcmp.eq.f32.partialorder %v1329_v38, 8.507059e+37 }
 0x24e   : > { %v1258_v14 = vsel %vm2960_vm6, %v1257_v1, %v1253_v9  ;;  %v983_v15 = vpop.f32.mrf.mxu3  ;;  %v1277_v20 = vsub.f32 1.0, %v1276_v11  ;;  %v2321_v23 = vpop.eup %2320  ;;  %2326 = vpow2.f32 %v2080_v18  ;;  %v1332_v52 = vor.u32 1.1754944e-38, %v1331_v39 }
 0x24f   : > { %1669 = vst [vmem:[%s2920_s10 + $0x20] sm:$0xff] %v1258_v14  ;;  %v984_v25 = vadd.f32 %v983_v15, %v2902_v17  ;;  %v2323_v27 = vpop.eup %2322  ;;  %v1298_v28 = vsel %vm1297_vm10, %v2315_v59, %v1294_v19  ;;  %v1321_v30 = vmul.f32 %v2321_v23, %v2954_v57  ;;  %2328 = vrcp.f32 %v2975_v22 }
 0x250   : > { %v1034_v26 = vpop.f32.mrf.mxu0  ;;  %v1278_v29 = vmul.f32 %v2317_v5, %v1277_v20  ;;  %v1303_v31 = vsel %vm1300_vm11, %v1302_v24, %v1298_v28  ;;  %v2988_v36 = vadd.f32 1.0, %v2323_v27  ;;  %vm1326_vm0 = vweird.f32 %v2321_v23 }
 0x251   : > { %1672 = vst [vmem:[%s2920_s10 + $0x38] sm:$0xff] %v1303_v31  ;;  %v1322_v35 = vsub.f32 1.0, %v1321_v30  ;;  %v2325_v37 = vpop.eup %2324  ;;  %v2079_v40 = vmul.f32 -1.442695, %v984_v25  ;;  %v1035_v43 = vadd.f32 %v1034_v26, %v2899_v12  ;;  %v1314_v46 = vand.u32 2147483647, %v2975_v22  ;;  %vm1327_vm2 = vmor %vm1325_vm1, %vm1326_vm0 }
 0x252   : > { %v1279_v32 = vadd.f32 %v2317_v5, %v1278_v29  ;;  %2330 = vrcp.f32 %v2988_v36  ;;  %v2999_v49 = vadd.f32 1.0, %v2325_v37  ;;  %v1316_v53 = vand.u32 2147483648, %v2975_v22 }
 0x253   : > { %v1323_v42 = vmul.f32 %v2321_v23, %v1322_v35  ;;  %2332 = vpow2.f32 %v2079_v40  ;;  %v1359_v54 = vand.u32 2147483647, %v2988_v36  ;;  %v2082_v58 = vmul.f32 -1.442695, %v1035_v43 }
 0x254   : > { %v1283_v41 = vsel %vm1282_vm15, %v2317_v5, %v1279_v32  ;;  %v2327_v44 = vpop.eup %2326  ;;  %2334 = vrcp.f32 %v2999_v49  ;;  %vm1310_vm4 = vweird.f32 %v2975_v22  ;;  %v1361_v60 = vand.u32 2147483648, %v2988_v36 }
 0x255   : > { %v1288_v45 = vsel %vm2982_vm14, %v1287_v34, %v1283_v41  ;;  %v1324_v48 = vadd.f32 %v2321_v23, %v1323_v42  ;;  %v3001_v50 = vadd.f32 1.0, %v2327_v44  ;;  %v2329_v51 = vpop.eup %2328  ;;  %vm3011_vm5 = vcmp.eq.f32.partialorder %v1314_v46, 8.507059e+37 }
 0x256   : > { %v985_v47 = vpop.f32.mrf.mxu3  ;;  %1671 = vst [vmem:[%s2920_s10 + $0x30] sm:$0xff] %v1288_v45  ;;  %v1306_v57 = vmul.f32 %v2329_v51, %v2975_v22  ;;  %v1317_v1 = vor.u32 1.1754944e-38, %v1316_v53  ;;  %vm1355_vm6 = vweird.f32 %v2988_v36  ;;  %vm3019_vm7 = vcmp.eq.f32.partialorder %v1359_v54, 8.507059e+37 }
 0x257   : > { %v1328_v56 = vsel %vm1327_vm2, %v2321_v23, %v1324_v48  ;;  %2336 = vrcp.f32 %v3001_v50  ;;  %v986_v0 = vadd.f32 %v985_v47, %v2902_v17  ;;  %vm1311_vm8 = vweird.f32 %v2329_v51 }
 0x258   : > { %v1037_v55 = vpop.f32.mrf.mxu0  ;;  %v1333_v59 = vsel %vm1330_vm3, %v1332_v52, %v1328_v56  ;;  %v2331_v61 = vpop.eup %2330  ;;  %v1307_v62 = vsub.f32 1.0, %v1306_v57  ;;  %v1344_v6 = vand.u32 2147483647, %v2999_v49  ;;  %2338 = vpow2.f32 %v2082_v58  ;;  %vm1312_vm10 = vmor %vm1310_vm4, %vm1311_vm8 }
 0x259   : > { %1674 = vst [vmem:[%s2920_s10 + $0x48] sm:$0xff] %v1333_v59  ;;  %v1351_v2 = vmul.f32 %v2331_v61, %v2988_v36  ;;  %v2333_v4 = vpop.eup %2332  ;;  %v1362_v8 = vor.u32 1.1754944e-38, %v1361_v60  ;;  %vm1340_vm9 = vweird.f32 %v2999_v49  ;;  %v1346_v14 = vand.u32 2147483648, %v2999_v49 }
 0x25a   : > { %v1308_v5 = vmul.f32 %v2329_v51, %v1307_v62  ;;  %v3025_v9 = vadd.f32 1.0, %v2333_v4  ;;  %v2335_v11 = vpop.eup %2334  ;;  %v1389_v16 = vand.u32 2147483647, %v3001_v50  ;;  %v2081_v18 = vmul.f32 -1.442695, %v986_v0 }
 0x25b   : > { %v1352_v7 = vsub.f32 1.0, %v1351_v2  ;;  %vm1356_vm11 = vweird.f32 %v2331_v61  ;;  %v1336_v19 = vmul.f32 %v2335_v11, %v2999_v49  ;;  %vm1385_vm12 = vweird.f32 %v3001_v50 }
 0x25c   : > { %v1309_v13 = vadd.f32 %v2329_v51, %v1308_v5  ;;  %2340 = vrcp.f32 %v3025_v9  ;;  %vm3034_vm13 = vcmp.eq.f32.partialorder %v1344_v6, 8.507059e+37  ;;  %v1038_v25 = vadd.f32 %v1037_v55, %v2899_v12  ;;  %vm1357_vm14 = vmor %vm1355_vm6, %vm1356_vm11 }
 0x25d   : > { %v1353_v15 = vmul.f32 %v2331_v61, %v1352_v7  ;;  %v2337_v21 = vpop.eup %2336  ;;  %v1337_v28 = vsub.f32 1.0, %v1336_v19  ;;  %vm1341_vm15 = vweird.f32 %v2335_v11  ;;  %v1347_v31 = vor.u32 1.1754944e-38, %v1346_v14 }
 0x25e   : > { %v988_v10 = vpop.f32.mrf.mxu3  ;;  %v1313_v23 = vsel %vm1312_vm10, %v2329_v51, %v1309_v13  ;;  %v1381_v29 = vmul.f32 %v2337_v21, %v3001_v50  ;;  %v2339_v30 = vpop.eup %2338  ;;  %v1391_v33 = vand.u32 2147483648, %v3001_v50  ;;  %2342 = vpow2.f32 %v2081_v18  ;;  %vm1342_vm1 = vmor %vm1340_vm9, %vm1341_vm15 }
 0x25f   : > { %v989_v22 = vadd.f32 %v988_v10, %v2902_v17  ;;  %v1318_v26 = vsel %vm3011_vm5, %v1317_v1, %v1313_v23  ;;  %v1354_v27 = vadd.f32 %v2331_v61, %v1353_v15  ;;  %v1338_v34 = vmul.f32 %v2335_v11, %v1337_v28 }
 0x260   : > { %v1039_v20 = vpop.f32.mrf.mxu0  ;;  %1673 = vst [vmem:[%s2920_s10 + $0x40] sm:$0xff] %v1318_v26  ;;  %v1382_v35 = vsub.f32 1.0, %v1381_v29  ;;  %v3048_v37 = vadd.f32 1.0, %v2339_v30  ;;  %vm1386_vm0 = vweird.f32 %v2337_v21  ;;  %v2084_v39 = vmul.f32 -1.442695, %v1038_v25 }
 0x261   : > { %v1358_v32 = vsel %vm1357_vm14, %v2331_v61, %v1354_v27  ;;  %v1040_v40 = vadd.f32 %v1039_v20, %v2899_v12  ;;  %v1339_v36 = vadd.f32 %v2335_v11, %v1338_v34  ;;  %v2083_v43 = vmul.f32 -1.442695, %v989_v22  ;;  %vm1387_vm3 = vmor %vm1385_vm12, %vm1386_vm0 }
 0x262   : > { %v1363_v38 = vsel %vm3019_vm7, %v1362_v8, %v1358_v32  ;;  %v2341_v41 = vpop.eup %2340  ;;  %v1383_v42 = vmul.f32 %v2337_v21, %v1382_v35  ;;  %2344 = vrcp.f32 %v3048_v37  ;;  %vm3058_vm2 = vcmp.eq.f32.partialorder %v1389_v16, 8.507059e+37 }
 0x263   : > { %1676 = vst [vmem:[%s2920_s10 + $0x58] sm:$0xff] %v1363_v38  ;;  %v1392_v46 = vor.u32 1.1754944e-38, %v1391_v33  ;;  %v1366_v47 = vmul.f32 %v2341_v41, %v3025_v9  ;;  %v1374_v48 = vand.u32 2147483647, %v3025_v9  ;;  %v1343_v51 = vsel %vm1342_vm1, %v2335_v11, %v1339_v36 }
 0x264   : > { %v1384_v52 = vadd.f32 %v2337_v21, %v1383_v42  ;;  %2346 = vpow2.f32 %v2084_v39  ;;  %v2086_v53 = vmul.f32 -1.442695, %v1040_v40  ;;  %v2343_v55 = vpop.eup %2342  ;;  %v1348_v49 = vsel %vm3034_vm13, %v1347_v31, %v1343_v51 }
 0x265   : > { %v1367_v56 = vsub.f32 1.0, %v1366_v47  ;;  %vm1371_vm4 = vweird.f32 %v2341_v41  ;;  %v1376_v57 = vand.u32 2147483648, %v3025_v9  ;;  %1675 = vst [vmem:[%s2920_s10 + $0x50] sm:$0xff] %v1348_v49  ;;  %v3071_v59 = vadd.f32 1.0, %v2343_v55 }
 0x266   : > { %v990_v44 = vpop.f32.mrf.mxu3  ;;  %v1388_v58 = vsel %vm1387_vm3, %v2337_v21, %v1384_v52  ;;  %2348 = vpow2.f32 %v2083_v43  ;;  %vm1370_vm5 = vweird.f32 %v3025_v9  ;;  %vm1375_vm6 = vcmp.eq.f32.partialorder %v1374_v48, 8.507059e+37 }
 0x267   : > { %v991_v60 = vadd.f32 %v990_v44, %v2902_v17  ;;  %v1393_v61 = vsel %vm3058_vm2, %v1392_v46, %v1388_v58  ;;  %v1368_v62 = vmul.f32 %v2341_v41, %v1367_v56  ;;  %2350 = vpow2.f32 %v2086_v53  ;;  %vm1372_vm7 = vmor %vm1370_vm5, %vm1371_vm4 }
 0x268   : > { %v1042_v54 = vpop.f32.mrf.mxu0  ;;  %v2345_v50 = vpop.eup %2344  ;;  %1678 = vst [vmem:[%s2920_s10 + $0x68] sm:$0xff] %v1393_v61  ;;  %2352 = vrcp.f32 %v3071_v59  ;;  %v1377_v4 = vor.u32 1.1754944e-38, %v1376_v57  ;;  %v1419_v5 = vand.u32 2147483647, %v3048_v37  ;;  %v1421_v6 = vand.u32 2147483648, %v3048_v37 }
 0x269   : > { %v1043_v63 = vadd.f32 %v1042_v54, %v2899_v12  ;;  %v1369_v0 = vadd.f32 %v2341_v41, %v1368_v62  ;;  %v1411_v1 = vmul.f32 %v2345_v50, %v3048_v37  ;;  %v2085_v2 = vmul.f32 -1.442695, %v991_v60 }
 0x26a   : > { %v2347_v3 = vpop.eup %2346  ;;  %v1404_v16 = vand.u32 2147483647, %v3071_v59  ;;  %v1406_v18 = vand.u32 2147483648, %v3071_v59  ;;  %vm1415_vm8 = vweird.f32 %v3048_v37  ;;  %vm1416_vm9 = vweird.f32 %v2345_v50 }
 0x26b   : > { %v2088_v7 = vmul.f32 -1.442695, %v1043_v63  ;;  %v1373_v10 = vsel %vm1372_vm7, %v2341_v41, %v1369_v0  ;;  %v1412_v9 = vsub.f32 1.0, %v1411_v1  ;;  %v3084_v11 = vadd.f32 1.0, %v2347_v3  ;;  %vm1417_vm12 = vmor %vm1415_vm8, %vm1416_vm9 }
 0x26c   : > { %2354 = vpow2.f32 %v2085_v2  ;;  %v2349_v13 = vpop.eup %2348  ;;  %v1378_v14 = vsel %vm1375_vm6, %v1377_v4, %v1373_v10  ;;  %vm3093_vm10 = vcmp.eq.f32.partialorder %v1419_v5, 8.507059e+37  ;;  %v1422_v27 = vor.u32 1.1754944e-38, %v1421_v6 }
 0x26d   : > { %2356 = vpow2.f32 %v2088_v7  ;;  %v2351_v19 = vpop.eup %2350  ;;  %1677 = vst [vmem:[%s2920_s10 + $0x60] sm:$0xff] %v1378_v14  ;;  %v1413_v20 = vmul.f32 %v2345_v50, %v1412_v9  ;;  %v3097_v24 = vadd.f32 1.0, %v2349_v13  ;;  %vm1400_vm11 = vweird.f32 %v3071_v59 }
 0x26e   : > { %v993_v8 = vpop.f32.mrf.mxu3  ;;  %2358 = vrcp.f32 %v3084_v11  ;;  %v2353_v21 = vpop.eup %2352  ;;  %v3099_v25 = vadd.f32 1.0, %v2351_v19  ;;  %vm3104_vm13 = vcmp.eq.f32.partialorder %v1404_v16, 8.507059e+37  ;;  %v1407_v30 = vor.u32 1.1754944e-38, %v1406_v18 }
 0x26f   : > { %v994_v22 = vadd.f32 %v993_v8, %v2902_v17  ;;  %v1414_v26 = vadd.f32 %v2345_v50, %v1413_v20  ;;  %v1396_v28 = vmul.f32 %v2353_v21, %v3071_v59  ;;  %v1449_v31 = vand.u32 2147483647, %v3084_v11 }
 0x270   : > { %v3088_v15 = vpop.f32.mrf.mxu0  ;;  %2360 = vrcp.f32 %v3097_v24  ;;  %v1451_v35 = vand.u32 2147483648, %v3084_v11  ;;  %vm1401_vm14 = vweird.f32 %v2353_v21  ;;  %vm1445_vm15 = vweird.f32 %v3084_v11 }
 0x271   : > { %v1418_v32 = vsel %vm1417_vm12, %v2345_v50, %v1414_v26  ;;  %v1397_v34 = vsub.f32 1.0, %v1396_v28  ;;  %2362 = vrcp.f32 %v3099_v25  ;;  %v2087_v39 = vmul.f32 -1.442695, %v994_v22  ;;  %vm1402_vm1 = vmor %vm1400_vm11, %vm1401_vm14 }
 0x272   : > { %v2355_v33 = vpop.eup %2354  ;;  %v1423_v38 = vsel %vm3093_vm10, %v1422_v27, %v1418_v32  ;;  %v1434_v42 = vand.u32 2147483647, %v3097_v24  ;;  %v1436_v43 = vand.u32 2147483648, %v3097_v24  ;;  %v1479_v46 = vand.u32 2147483647, %v3099_v25 }
 0x273   : > { %v2357_v37 = vpop.eup %2356  ;;  %1680 = vst [vmem:[%s2920_s10 + $0x78] sm:$0xff] %v1423_v38  ;;  %v1398_v36 = vmul.f32 %v2353_v21, %v1397_v34  ;;  %v3118_v44 = vadd.f32 1.0, %v2355_v33  ;;  %v1481_v47 = vand.u32 2147483648, %v3099_v25  ;;  %vm3125_vm0 = vcmp.eq.f32.partialorder %v1449_v31, 8.507059e+37 }
 0x274   : > { %v2359_v41 = vpop.eup %2358  ;;  %v3123_v48 = vadd.f32 1.0, %v2357_v37  ;;  %v1452_v54 = vor.u32 1.1754944e-38, %v1451_v35  ;;  %vm1430_vm2 = vweird.f32 %v3097_v24  ;;  %vm1475_vm3 = vweird.f32 %v3099_v25 }
 0x275   : > { %v1441_v45 = vmul.f32 %v2359_v41, %v3084_v11  ;;  %v1399_v52 = vadd.f32 %v2353_v21, %v1398_v36  ;;  %2364 = vrcp.f32 %v3118_v44  ;;  %vm1446_vm4 = vweird.f32 %v2359_v41 }
 0x276   : > { %v995_v40 = vpop.f32.mrf.mxu3  ;;  %v2361_v55 = vpop.eup %2360  ;;  %2366 = vrcp.f32 %v3123_v48  ;;  %vm3137_vm5 = vcmp.eq.f32.partialorder %v1434_v42, 8.507059e+37  ;;  %v1437_v61 = vor.u32 1.1754944e-38, %v1436_v43  ;;  %vm3144_vm6 = vcmp.eq.f32.partialorder %v1479_v46, 8.507059e+37  ;;  %vm1447_vm10 = vmor %vm1445_vm15, %vm1446_vm4 }
 0x277   : > { %v1442_v49 = vsub.f32 1.0, %v1441_v45  ;;  %v2363_v56 = vpop.eup %2362  ;;  %v1403_v57 = vsel %vm1402_vm1, %v2353_v21, %v1399_v52  ;;  %v1426_v58 = vmul.f32 %v2361_v55, %v3097_v24  ;;  %v1482_v0 = vor.u32 1.1754944e-38, %v1481_v47 }
 0x278   : > { %v1047_v51 = vpop.f32.mrf.mxu0  ;;  %v1408_v59 = vsel %vm3104_vm13, %v1407_v30, %v1403_v57  ;;  %v1471_v63 = vmul.f32 %v2363_v56, %v3099_v25  ;;  %vm1431_vm7 = vweird.f32 %v2361_v55  ;;  %v1464_v2 = vand.u32 2147483647, %v3118_v44 }
 0x279   : > { %v1443_v62 = vmul.f32 %v2359_v41, %v1442_v49  ;;  %1679 = vst [vmem:[%s2920_s10 + $0x70] sm:$0xff] %v1408_v59  ;;  %v1427_v1 = vsub.f32 1.0, %v1426_v58  ;;  %v1466_v3 = vand.u32 2147483648, %v3118_v44  ;;  %vm1476_vm8 = vweird.f32 %v2363_v56  ;;  %vm1432_vm13 = vmor %vm1430_vm2, %vm1431_vm7 }
 0x27a   : > { %v1472_v5 = vsub.f32 1.0, %v1471_v63  ;;  %vm1460_vm9 = vweird.f32 %v3118_v44  ;;  %2368 = vpow2.f32 %v2087_v39  ;;  %vm1505_vm11 = vweird.f32 %v3123_v48  ;;  %vm1477_vm15 = vmor %vm1475_vm3, %vm1476_vm8 }
 0x27b   : > { %v1444_v4 = vadd.f32 %v2359_v41, %v1443_v62  ;;  %v2365_v7 = vpop.eup %2364  ;;  %v1428_v8 = vmul.f32 %v2361_v55, %v1427_v1  ;;  %v1509_v10 = vand.u32 2147483647, %v3123_v48  ;;  %v1045_v9 = vadd.f32 %v3088_v15, %v2899_v12 }
 0x27c   : > { %v996_v13 = vadd.f32 %v995_v40, %v2902_v17  ;;  %v2367_v14 = vpop.eup %2366  ;;  %v1473_v18 = vmul.f32 %v2363_v56, %v1472_v5  ;;  %v1456_v19 = vmul.f32 %v2365_v7, %v3118_v44  ;;  %v1511_v20 = vand.u32 2147483648, %v3123_v48 }
 0x27d   : > { %v1448_v16 = vsel %vm1447_vm10, %v2359_v41, %v1444_v4  ;;  %v1429_v21 = vadd.f32 %v2361_v55, %v1428_v8  ;;  %vm1461_vm12 = vweird.f32 %v2365_v7  ;;  %v1501_v23 = vmul.f32 %v2367_v14, %v3123_v48 }
 0x27e   : > { %v998_v6 = vpop.f32.mrf.mxu3  ;;  %v1453_v11 = vsel %vm3125_vm0, %v1452_v54, %v1448_v16  ;;  %v1474_v15 = vadd.f32 %v2363_v56, %v1473_v18  ;;  %v1457_v22 = vsub.f32 1.0, %v1456_v19  ;;  %vm1506_vm14 = vweird.f32 %v2367_v14  ;;  %vm1462_vm0 = vmor %vm1460_vm9, %vm1461_vm12 }
 0x27f   : > { %1682 = vst [vmem:[%s2920_s10 + $0x88] sm:$0xff] %v1453_v11  ;;  %v2090_v26 = vmul.f32 -1.442695, %v1045_v9  ;;  %v1433_v28 = vsel %vm1432_vm13, %v2361_v55, %v1429_v21  ;;  %v1502_v29 = vsub.f32 1.0, %v1501_v23  ;;  %v2089_v30 = vmul.f32 -1.442695, %v996_v13  ;;  %vm1507_vm2 = vmor %vm1505_vm11, %vm1506_vm14 }
 0x280   : > { %v1049_v27 = vpop.f32.mrf.mxu0  ;;  %v1048_v31 = vadd.f32 %v1047_v51, %v2899_v12  ;;  %v2369_v33 = vpop.eup %2368  ;;  %v1438_v24 = vsel %vm3137_vm5, %v1437_v61, %v1433_v28  ;;  %v1478_v32 = vsel %vm1477_vm15, %v2363_v56, %v1474_v15  ;;  %v1458_v34 = vmul.f32 %v2365_v7, %v1457_v22 }
 0x281   : > { %2370 = vpow2.f32 %v2090_v26  ;;  %1681 = vst [vmem:[%s2920_s10 + $0x80] sm:$0xff] %v1438_v24  ;;  %v1483_v35 = vsel %vm3144_vm6, %v1482_v0, %v1478_v32  ;;  %v1503_v37 = vmul.f32 %v2367_v14, %v1502_v29  ;;  %v3178_v38 = vadd.f32 1.0, %v2369_v33 }
 0x282   : > { %2372 = vpow2.f32 %v2089_v30  ;;  %1684 = vst [vmem:[%s2920_s10 + $0x98] sm:$0xff] %v1483_v35  ;;  %v1459_v25 = vadd.f32 %v2365_v7, %v1458_v34  ;;  %v2092_v39 = vmul.f32 -1.442695, %v1048_v31  ;;  %v999_v40 = vadd.f32 %v998_v6, %v2902_v17 }
 0x283   : > { %v1050_v41 = vadd.f32 %v1049_v27, %v2899_v12  ;;  %vm1465_vm1 = vcmp.eq.f32.partialorder %v1464_v2, 8.507059e+37  ;;  %v1467_v36 = vor.u32 1.1754944e-38, %v1466_v3  ;;  %v1504_v42 = vadd.f32 %v2367_v14, %v1503_v37 }
 0x284   : > { %2374 = vrcp.f32 %v3178_v38  ;;  %v1463_v45 = vsel %vm1462_vm0, %v2365_v7, %v1459_v25  ;;  %v1512_v46 = vor.u32 1.1754944e-38, %v1511_v20  ;;  %v2091_v47 = vmul.f32 -1.442695, %v999_v40 }
 0x285   : > { %2376 = vpow2.f32 %v2092_v39  ;;  %v1468_v51 = vsel %vm1465_vm1, %v1467_v36, %v1463_v45  ;;  %v1508_v52 = vsel %vm1507_vm2, %v2367_v14, %v1504_v42  ;;  %vm1510_vm3 = vcmp.eq.f32.partialorder %v1509_v10, 8.507059e+37 }
 0x286   : > { %v1000_v43 = vpop.f32.mrf.mxu3  ;;  %v2094_v44 = vmul.f32 -1.442695, %v1050_v41  ;;  %1683 = vst [vmem:[%s2920_s10 + $0x90] sm:$0xff] %v1468_v51  ;;  %v1513_v54 = vsel %vm1510_vm3, %v1512_v46, %v1508_v52  ;;  %2378 = vpow2.f32 %v2091_v47  ;;  %v1494_v62 = vand.u32 2147483647, %v3178_v38 }
 0x287   : > { %v2371_v53 = vpop.eup %2370  ;;  %v1001_v55 = vadd.f32 %v1000_v43, %v2902_v17  ;;  %1686 = vst [vmem:[%s2920_s10 + $0xa8] sm:$0xff] %v1513_v54  ;;  %v1496_v63 = vand.u32 2147483648, %v3178_v38  ;;  %vm1490_vm4 = vweird.f32 %v3178_v38 }
 0x288   : > { %v2373_v49 = vpop.eup %2372  ;;  %v3193_v56 = vadd.f32 1.0, %v2371_v53  ;;  %2380 = vpow2.f32 %v2094_v44  ;;  %v1052_v58 = vpop.f32.mrf.mxu0  ;;  %vm3213_vm6 = vcmp.eq.f32.partialorder %v1494_v62, 8.507059e+37 }
 0x289   : > { %v3195_v57 = vadd.f32 1.0, %v2373_v49  ;;  %v2093_v48 = vmul.f32 -1.442695, %v1001_v55  ;;  %v1053_v50 = vadd.f32 %v1052_v58, %v2899_v12  ;;  %v1497_v14 = vor.u32 1.1754944e-38, %v1496_v63 }
 0x28a   : > { %v2375_v60 = vpop.eup %2374  ;;  %2382 = vrcp.f32 %v3193_v56  ;;  %v1539_v3 = vand.u32 2147483647, %v3193_v56  ;;  %v1541_v4 = vand.u32 2147483648, %v3193_v56  ;;  %vm1535_vm7 = vweird.f32 %v3193_v56 }
 0x28b   : > { %v2377_v61 = vpop.eup %2376  ;;  %v1486_v59 = vmul.f32 %v2375_v60, %v3178_v38  ;;  %2384 = vrcp.f32 %v3195_v57  ;;  %v1524_v5 = vand.u32 2147483647, %v3195_v57  ;;  %vm1491_vm5 = vweird.f32 %v2375_v60 }
 0x28c   : > { %v2379_v0 = vpop.eup %2378  ;;  %v3204_v2 = vadd.f32 1.0, %v2377_v61  ;;  %2386 = vpow2.f32 %v2093_v48  ;;  %v1526_v10 = vand.u32 2147483648, %v3195_v57  ;;  %v2096_v16 = vmul.f32 -1.442695, %v1053_v50  ;;  %vm1492_vm9 = vmor %vm1490_vm4, %vm1491_vm5 }
 0x28d   : > { %v1487_v1 = vsub.f32 1.0, %v1486_v59  ;;  %v3209_v6 = vadd.f32 1.0, %v2379_v0  ;;  %vm1520_vm8 = vweird.f32 %v3195_v57  ;;  %vm3223_vm10 = vcmp.eq.f32.partialorder %v1539_v3, 8.507059e+37 }
 0x28e   : > { %v2381_v7 = vpop.eup %2380  ;;  %2388 = vrcp.f32 %v3204_v2  ;;  %v1542_v21 = vor.u32 1.1754944e-38, %v1541_v4  ;;  %vm3228_vm11 = vcmp.eq.f32.partialorder %v1524_v5, 8.507059e+37  ;;  %v1003_v22 = vpop.f32.mrf.mxu3  ;;  %v1527_v29 = vor.u32 1.1754944e-38, %v1526_v10 }
 0x28f   : > { %v1488_v8 = vmul.f32 %v2375_v60, %v1487_v1  ;;  %2390 = vrcp.f32 %v3209_v6  ;;  %v3232_v30 = vadd.f32 1.0, %v2381_v7  ;;  %v1004_v35 = vadd.f32 %v1003_v22, %v2902_v17 }
 0x290   : > { %v2383_v9 = vpop.eup %2382  ;;  %2392 = vpow2.f32 %v2096_v16  ;;  %vm1565_vm14 = vweird.f32 %v3204_v2  ;;  %v1569_v40 = vand.u32 2147483647, %v3204_v2  ;;  %v1571_v41 = vand.u32 2147483648, %v3204_v2  ;;  %v1054_v3 = vpop.f32.mrf.mxu0 }
 0x291   : > { %v2385_v18 = vpop.eup %2384  ;;  %v1489_v19 = vadd.f32 %v2375_v60, %v1488_v8  ;;  %v1531_v20 = vmul.f32 %v2383_v9, %v3193_v56  ;;  %vm1536_vm12 = vweird.f32 %v2383_v9  ;;  %2394 = vrcp.f32 %v3232_v30 }
 0x292   : > { %v1516_v23 = vmul.f32 %v2385_v18, %v3195_v57  ;;  %v2387_v26 = vpop.eup %2386  ;;  %vm1521_vm13 = vweird.f32 %v2385_v18  ;;  %vm1537_vm15 = vmor %vm1535_vm7, %vm1536_vm12  ;;  %vm1550_vm0 = vweird.f32 %v3209_v6  ;;  %v1554_v47 = vand.u32 2147483647, %v3209_v6 }
 0x293   : > { %v1493_v27 = vsel %vm1492_vm9, %v2375_v60, %v1489_v19  ;;  %v1532_v28 = vsub.f32 1.0, %v1531_v20  ;;  %v3236_v24 = vadd.f32 1.0, %v2387_v26  ;;  %vm1522_vm1 = vmor %vm1520_vm8, %vm1521_vm13  ;;  %v1556_v51 = vand.u32 2147483648, %v3209_v6 }
 0x294   : > { %v1498_v31 = vsel %vm3213_vm6, %v1497_v14, %v1493_v27  ;;  %v1517_v33 = vsub.f32 1.0, %v1516_v23  ;;  %v2389_v32 = vpop.eup %2388  ;;  %vm3262_vm4 = vcmp.eq.f32.partialorder %v1569_v40, 8.507059e+37  ;;  %v1601_v61 = vand.u32 2147483648, %v3232_v30 }
 0x295   : > { %1685 = vst [vmem:[%s2920_s10 + $0xa0] sm:$0xff] %v1498_v31  ;;  %v1533_v34 = vmul.f32 %v2383_v9, %v1532_v28  ;;  %v2391_v37 = vpop.eup %2390  ;;  %v1561_v25 = vmul.f32 %v2389_v32, %v3204_v2  ;;  %2396 = vrcp.f32 %v3236_v24  ;;  %vm1566_vm2 = vweird.f32 %v2389_v32 }
 0x296   : > { %v1518_v38 = vmul.f32 %v2385_v18, %v1517_v33  ;;  %v1546_v36 = vmul.f32 %v2391_v37, %v3209_v6  ;;  %v2393_v52 = vpop.eup %2392  ;;  %vm1551_vm3 = vweird.f32 %v2391_v37  ;;  %vm1567_vm5 = vmor %vm1565_vm14, %vm1566_vm2  ;;  %v1572_v59 = vor.u32 1.1754944e-38, %v1571_v41  ;;  %v1005_v4 = vpop.f32.mrf.mxu3 }
 0x297   : > { %v1534_v39 = vadd.f32 %v2383_v9, %v1533_v34  ;;  %v1562_v43 = vsub.f32 1.0, %v1561_v25  ;;  %v2395_v55 = vpop.eup %2394  ;;  %v3259_v57 = vadd.f32 1.0, %v2393_v52  ;;  %vm1555_vm6 = vcmp.eq.f32.partialorder %v1554_v47, 8.507059e+37  ;;  %vm1552_vm7 = vmor %vm1550_vm0, %vm1551_vm3 }
 0x298   : > { %v1519_v42 = vadd.f32 %v2385_v18, %v1518_v38  ;;  %v1547_v46 = vsub.f32 1.0, %v1546_v36  ;;  %v1591_v60 = vmul.f32 %v2395_v55, %v3232_v30  ;;  %v1557_v0 = vor.u32 1.1754944e-38, %v1556_v51 }
 0x299   : > { %v1538_v45 = vsel %vm1537_vm15, %v2383_v9, %v1534_v39  ;;  %v1563_v54 = vmul.f32 %v2389_v32, %v1562_v43  ;;  %2398 = vrcp.f32 %v3259_v57  ;;  %vm1595_vm8 = vweird.f32 %v3232_v30 }
 0x29a   : > { %v1543_v44 = vsel %vm3223_vm10, %v1542_v21, %v1538_v45  ;;  %v1523_v53 = vsel %vm1522_vm1, %v2385_v18, %v1519_v42  ;;  %v1548_v56 = vmul.f32 %v2391_v37, %v1547_v46  ;;  %v1592_v1 = vsub.f32 1.0, %v1591_v60 }
 0x29b   : > { %1688 = vst [vmem:[%s2920_s10 + $0xb8] sm:$0xff] %v1543_v44  ;;  %v1528_v49 = vsel %vm3228_vm11, %v1527_v29, %v1523_v53  ;;  %v1564_v48 = vadd.f32 %v2389_v32, %v1563_v54  ;;  %v2397_v63 = vpop.eup %2396  ;;  %v1599_v7 = vand.u32 2147483647, %v3232_v30  ;;  %vm1596_vm9 = vweird.f32 %v2395_v55 }
 0x29c   : > { %1687 = vst [vmem:[%s2920_s10 + $0xb0] sm:$0xff] %v1528_v49  ;;  %v1549_v62 = vadd.f32 %v2391_v37, %v1548_v56  ;;  %v1576_v8 = vmul.f32 %v2397_v63, %v3236_v24  ;;  %v1593_v9 = vmul.f32 %v2395_v55, %v1592_v1  ;;  %v1602_v6 = vor.u32 1.1754944e-38, %v1601_v61  ;;  %vm1597_vm11 = vmor %vm1595_vm8, %vm1596_vm9 }
 0x29d   : > { %v1568_v50 = vsel %vm1567_vm5, %v2389_v32, %v1564_v48  ;;  %v2095_v14 = vmul.f32 -1.442695, %v1004_v35  ;;  %v1055_v16 = vadd.f32 %v1054_v3, %v2899_v12  ;;  %v1006_v18 = vadd.f32 %v1005_v4, %v2902_v17 }
 0x29e   : > { %v1573_v2 = vsel %vm3262_vm4, %v1572_v59, %v1568_v50  ;;  %v1553_v5 = vsel %vm1552_vm7, %v2391_v37, %v1549_v62  ;;  %v1577_v13 = vsub.f32 1.0, %v1576_v8  ;;  %v1594_v19 = vadd.f32 %v2395_v55, %v1593_v9 }
 0x29f   : > { %1690 = vst [vmem:[%s2920_s10 + $0xc8] sm:$0xff] %v1573_v2  ;;  %v1558_v10 = vsel %vm1555_vm6, %v1557_v0, %v1553_v5  ;;  %vm1581_vm10 = vweird.f32 %v2397_v63  ;;  %v1584_v20 = vand.u32 2147483647, %v3236_v24  ;;  %v1586_v11 = vand.u32 2147483648, %v3236_v24  ;;  %v2399_v21 = vpop.eup %2398 }
 0x2a0   : > { %1689 = vst [vmem:[%s2920_s10 + $0xc0] sm:$0xff] %v1558_v10  ;;  %v1578_v23 = vmul.f32 %v2397_v63, %v1577_v13  ;;  %2400 = vpow2.f32 %v2095_v14  ;;  %v2098_v15 = vmul.f32 -1.442695, %v1055_v16  ;;  %v2097_v22 = vmul.f32 -1.442695, %v1006_v18 }
 0x2a1   : > { %v1598_v26 = vsel %vm1597_vm11, %v2395_v55, %v1594_v19  ;;  %vm1600_vm12 = vcmp.eq.f32.partialorder %v1599_v7, 8.507059e+37  ;;  %v1621_v12 = vmul.f32 %v2399_v21, %v3259_v57  ;;  %vm1580_vm13 = vweird.f32 %v3236_v24 }
 0x2a2   : > { %v1603_v17 = vsel %vm1600_vm12, %v1602_v6, %v1598_v26  ;;  %v1579_v27 = vadd.f32 %v2397_v63, %v1578_v23  ;;  %2402 = vpow2.f32 %v2098_v15  ;;  %vm1582_vm14 = vmor %vm1580_vm13, %vm1581_vm10  ;;  %v1587_v28 = vor.u32 1.1754944e-38, %v1586_v11 }
 0x2a3   : > { %1692 = vst [vmem:[%s2920_s10 + $0xd8] sm:$0xff] %v1603_v17  ;;  %v1622_v29 = vsub.f32 1.0, %v1621_v12  ;;  %2404 = vpow2.f32 %v2097_v22  ;;  %vm1585_vm15 = vcmp.eq.f32.partialorder %v1584_v20, 8.507059e+37  ;;  %v1631_v31 = vand.u32 2147483648, %v3259_v57 }
 0x2a4   : > { %v1583_v30 = vsel %vm1582_vm14, %v2397_v63, %v1579_v27  ;;  %vm1626_vm0 = vweird.f32 %v2399_v21  ;;  %v1629_v34 = vand.u32 2147483647, %v3259_v57  ;;  %vm1625_vm1 = vweird.f32 %v3259_v57 }
 0x2a5   : > { %v1588_v33 = vsel %vm1585_vm15, %v1587_v28, %v1583_v30  ;;  %v1623_v32 = vmul.f32 %v2399_v21, %v1622_v29  ;;  %vm1627_vm2 = vmor %vm1625_vm1, %vm1626_vm0  ;;  %v1632_v25 = vor.u32 1.1754944e-38, %v1631_v31 }
 0x2a6   : > { %v2401_v35 = vpop.eup %2400  ;;  %1691 = vst [vmem:[%s2920_s10 + $0xd0] sm:$0xff] %v1588_v33  ;;  %vm1630_vm3 = vcmp.eq.f32.partialorder %v1629_v34, 8.507059e+37 }
 0x2a7   : > { %v1624_v24 = vadd.f32 %v2399_v21, %v1623_v32  ;;  %v1181_v37 = vadd.f32 1.0, %v2401_v35 }
 0x2a8   : > { %v2403_v38 = vpop.eup %2402 }
 0x2a9   : > { %v2405_v39 = vpop.eup %2404  ;;  %v1628_v40 = vsel %vm1627_vm2, %v2399_v21, %v1624_v24  ;;  %2406 = vrcp.f32 %v1181_v37  ;;  %v1184_v36 = vadd.f32 1.0, %v2403_v38  ;;  %v1614_v46 = vand.u32 2147483647, %v1181_v37 }
 0x2aa   : > { %v1633_v41 = vsel %vm1630_vm3, %v1632_v25, %v1628_v40  ;;  %v1183_v42 = vadd.f32 1.0, %v2405_v39  ;;  %v1616_v52 = vand.u32 2147483648, %v1181_v37  ;;  %vm1610_vm5 = vweird.f32 %v1181_v37 }
 0x2ab   : > { %1694 = vst [vmem:[%s2920_s10 + $0xe8] sm:$0xff] %v1633_v41  ;;  %2408 = vrcp.f32 %v1184_v36  ;;  %vm3296_vm6 = vcmp.eq.f32.partialorder %v1614_v46, 8.507059e+37  ;;  %v1661_v58 = vand.u32 2147483648, %v1184_v36  ;;  %v1659_v59 = vand.u32 2147483647, %v1184_v36 }
 0x2ac   : > { %2410 = vrcp.f32 %v1183_v42  ;;  %v1617_v48 = vor.u32 1.1754944e-38, %v1616_v52  ;;  %v1646_v62 = vand.u32 2147483648, %v1183_v42  ;;  %v1644_v0 = vand.u32 2147483647, %v1183_v42 }
 0x2ad   : > { %vm1655_vm10 = vweird.f32 %v1184_v36  ;;  %v1662_v4 = vor.u32 1.1754944e-38, %v1661_v58  ;;  %vm1640_vm12 = vweird.f32 %v1183_v42  ;;  %vm1660_vm13 = vcmp.eq.f32.partialorder %v1659_v59, 8.507059e+37 }
 0x2ae   : > { %v1647_v7 = vor.u32 1.1754944e-38, %v1646_v62  ;;  %vm1645_vm15 = vcmp.eq.f32.partialorder %v1644_v0, 8.507059e+37 }
 0x2af   : > { %v2407_v43 = vpop.eup %2406 }
 0x2b0   : > { %v1606_v45 = vmul.f32 %v2407_v43, %v1181_v37  ;;  %vm1611_vm4 = vweird.f32 %v2407_v43 }
 0x2b1   : > { %v2409_v47 = vpop.eup %2408  ;;  %vm1612_vm7 = vmor %vm1610_vm5, %vm1611_vm4 }
 0x2b2   : > { %v1607_v51 = vsub.f32 1.0, %v1606_v45  ;;  %v2411_v44 = vpop.eup %2410  ;;  %v1651_v53 = vmul.f32 %v2409_v47, %v1184_v36  ;;  %vm1656_vm8 = vweird.f32 %v2409_v47 }
 0x2b3   : > { %v1636_v55 = vmul.f32 %v2411_v44, %v1183_v42  ;;  %vm1641_vm9 = vweird.f32 %v2411_v44  ;;  %vm1657_vm11 = vmor %vm1655_vm10, %vm1656_vm8 }
 0x2b4   : > { %v1608_v54 = vmul.f32 %v2407_v43, %v1607_v51  ;;  %v1652_v56 = vsub.f32 1.0, %v1651_v53  ;;  %vm1642_vm14 = vmor %vm1640_vm12, %vm1641_vm9 }
 0x2b5   : > { %v1637_v60 = vsub.f32 1.0, %v1636_v55 }
 0x2b6   : > { %v1609_v57 = vadd.f32 %v2407_v43, %v1608_v54  ;;  %v1653_v61 = vmul.f32 %v2409_v47, %v1652_v56 }
 0x2b7   : > { %v1638_v50 = vmul.f32 %v2411_v44, %v1637_v60 }
 0x2b8   : > { %v1613_v63 = vsel %vm1612_vm7, %v2407_v43, %v1609_v57  ;;  %v1654_v3 = vadd.f32 %v2409_v47, %v1653_v61 }
 0x2b9   : > { %v1618_v1 = vsel %vm3296_vm6, %v1617_v48, %v1613_v63  ;;  %v1639_v2 = vadd.f32 %v2411_v44, %v1638_v50 }
 0x2ba   : > { %1693 = vst [vmem:[%s2920_s10 + $0xe0] sm:$0xff] %v1618_v1  ;;  %v1658_v5 = vsel %vm1657_vm11, %v2409_v47, %v1654_v3 }
 0x2bb   : > { %v1663_v8 = vsel %vm1660_vm13, %v1662_v4, %v1658_v5  ;;  %v1643_v10 = vsel %vm1642_vm14, %v2411_v44, %v1639_v2 }
 0x2bc   : > { %1696 = vst [vmem:[%s2920_s10 + $0xf8] sm:$0xff] %v1663_v8  ;;  %v1648_v9 = vsel %vm1645_vm15, %v1647_v7, %v1643_v10 }
 0x2bd   : > { %1695 = vst [vmem:[%s2920_s10 + $0xf0] sm:$0xff] %v1648_v9 }
 0x2be   : > { %2589 = shalt.err (!%p2586_p10)
}
 0x2bf   : > { %s2646_s13 = smov 256   ;;  %s2647_s10 = smov 16  }
 0x2c0   : > { %2207 = dma.vmem_to_hbm [thread:$0]  (%p2777_p3), %s1712_s28, 4096, %s1714_s17, %s1698_s22, %s2646_s13, %s2646_s13, %s2647_s10  }
 0x2c1 PF: > { %p2239_p11 = scmp.ge.s32.totalorder %s2636_s27, 2  ;;  %s1728_s16 = sand.u32 1, %s2624_s24  }
 0x2c2   : > { %s1729_s11 = scalar_lea.sflag [#allocation4], %s1728_s16 }
 0x2c3   : > { %p2227_p12 = pnand %p2239_p11, %p2723_p6 }
 0x2c5   : > { %p2228_p13 = pneg %p2227_p12 }
 0x2c7   : > { %2619 = dma.done.wait (%p2228_p13), %s1729_s11, 4096  }
 0x2c8   : > { %2621 = vsyncadd (%p2228_p13), %s1729_s11, 4294963200  ;;  %p22_p0 = scmp.ge.s32.totalorder %s2764_s23, 6   ;;  %s3392_s24 = smov %s2628_s25 }
 0x2c9   : > { %s3393_s25 = smov %s2632_s26  ;;  %s3394_s26 = smov %s2773_s19 }
 0x2ca   : > { %s3395_s27 = smov %s2764_s23  ;;  %24 = sbr.rel (!%p22_p0) target bundleno = 9 (0x9), region = 109 }
 0x2cf   :  { %1735 = vsyncpa [#allocation3], 1 }
 0x2d0   :  { %1737 = vsyncpa [#allocation3 + $0x1], 1 }
 0x2d1   :  { %1738 = vsyncpa [#allocation6], 1 }
 0x2d2   :  { %1739 = vsyncpa [#allocation9], 1 }
 0x2d3   :  { %1740 = vsyncpa [#allocation4], 1 }
 0x2d4   :  { %1742 = vsyncpa [#allocation4 + $0x1], 1 }

</bundles_post_ra>
